<compile_context>
chip_gen: v5e
topology: v5e:2x2
jax: 0.10.0
libtpu: 0.0.40
codegen_flags: <defaults>
</compile_context>

<pallas_src>
import functools
import math

import jax
import jax.numpy as jnp
from jax.experimental import pallas as pl
from jax.experimental.pallas import tpu as pltpu


# dtype fed to the MXU (activations cast in-kernel; weights pre-cast at init).
MXU_DTYPE = jnp.bfloat16
# dtype of the weight matrices held in HBM (pre-cast once at init time).
W_DTYPE = jnp.bfloat16
# dtype of the hidden activations between pallas_calls.  Kept f32 to stay close to the
# PyTorch reference; flip to jnp.bfloat16 on v5e to halve inter-kernel HBM traffic.
ACT_DTYPE = jnp.float32

_SQRT_2_OVER_PI = 0.7978845608028654
_MB = 1024 * 1024


# ----------------------------------------------------------------------------- helpers

def _gelu(x):
    # TODO(synk): HF BERT uses exact erf-GELU; tanh approximation is used because erf is
    # not guaranteed to lower in Mosaic.
    return 0.5 * x * (1.0 + jnp.tanh(_SQRT_2_OVER_PI * (x + 0.044715 * x * x * x)))


def _ln(y, g, b, eps):
    mu = jnp.mean(y, axis=-1, keepdims=True)
    var = jnp.mean((y - mu) * (y - mu), axis=-1, keepdims=True)  # biased var (PyTorch LN)
    return (y - mu) * jax.lax.rsqrt(var + eps) * g + b


def _pick_row_tile(M, max_tile=512):
    """Row (token) tile: 8-aligned, prefers >=2 grid steps (keeps both v7x TCs busy)."""
    if M % 8 != 0 or M <= 8:
        # TODO(synk): pad the token axis to a multiple of 8 for large ragged M instead of
        # falling back to one full block.
        return M
    for t in (512, 256, 128, 64, 32, 16, 8):
        if t <= max_tile and M % t == 0 and M // t >= 2:
            return t
    return M


def _vmem_limit_bytes(estimate_bytes):
    """2x slack over the estimated footprint, floored at the 32 MiB scoped default and
    capped at v7x's 64 MiB physical VMEM."""
    return int(min(64 * _MB, max(32 * _MB, 2 * int(estimate_bytes))))


def _const_spec(shape):
    """BlockSpec for an operand whose block never changes across grid steps (weights,
    biases, gamma/beta): constant index map + single-buffered (no wasted VMEM)."""
    zeros = (0,) * len(shape)
    return pl.BlockSpec(shape, lambda *_: zeros, pipeline_mode=pl.Buffered(1))


# ----------------------------------------------------------------------------- kernels

def _dense_kernel(x_ref, w_ref, b_ref, o_ref):
    y = jnp.dot(x_ref[...].astype(MXU_DTYPE), w_ref[...].astype(MXU_DTYPE),
                preferred_element_type=jnp.float32) + b_ref[...]
    o_ref[...] = y.astype(o_ref.dtype)


def dense(x, w, b):
    """y = x @ w + b; x:[M,K] f32, w:[K,N] bf16, b:[N] f32 -> [M,N]."""
    M, K = x.shape
    N = w.shape[1]
    tm = _pick_row_tile(M)
    return pl.pallas_call(
        _dense_kernel,
        grid=(M // tm,),
        in_specs=[
            pl.BlockSpec((tm, K), lambda i: (i, 0)),
            _const_spec((K, N)),
            _const_spec((1, N)),
        ],
        out_specs=pl.BlockSpec((tm, N), lambda i: (i, 0)),
        out_shape=jax.ShapeDtypeStruct((M, N), ACT_DTYPE),
        compiler_params=pltpu.CompilerParams(dimension_semantics=("parallel",)),
    )(x, w, b.reshape(1, N))


def _dense_res_ln_kernel(x_ref, w_ref, b_ref, r_ref, g_ref, bt_ref, o_ref, *, eps):
    y = jnp.dot(x_ref[...].astype(MXU_DTYPE), w_ref[...].astype(MXU_DTYPE),
                preferred_element_type=jnp.float32) + b_ref[...] + r_ref[...]
    o_ref[...] = _ln(y, g_ref[...], bt_ref[...], eps).astype(o_ref.dtype)


def dense_residual_layernorm(x, w, b, residual, gamma, beta, eps=1e-12):
    """LayerNorm((x @ w + b) + residual); x:[M,K], w:[K,N] bf16, residual:[M,N]."""
    M, K = x.shape
    N = w.shape[1]
    tm = _pick_row_tile(M)
    kernel = functools.partial(_dense_res_ln_kernel, eps=eps)
    return pl.pallas_call(
        kernel,
        grid=(M // tm,),
        in_specs=[
            pl.BlockSpec((tm, K), lambda i: (i, 0)),
            _const_spec((K, N)),
            _const_spec((1, N)),
            pl.BlockSpec((tm, N), lambda i: (i, 0)),
            _const_spec((1, N)),
            _const_spec((1, N)),
        ],
        out_specs=pl.BlockSpec((tm, N), lambda i: (i, 0)),
        out_shape=jax.ShapeDtypeStruct((M, N), ACT_DTYPE),
        compiler_params=pltpu.CompilerParams(dimension_semantics=("parallel",)),
    )(x, w, b.reshape(1, N), residual, gamma.reshape(1, N), beta.reshape(1, N))


def _ffn_ln_kernel(x_ref, w1_ref, b1_ref, w2_ref, b2_ref, g_ref, bt_ref, o_ref, *, eps):
    x = x_ref[...]
    h1 = jnp.dot(x.astype(MXU_DTYPE), w1_ref[...].astype(MXU_DTYPE),
                 preferred_element_type=jnp.float32) + b1_ref[...]
    h1 = _gelu(h1)
    y = jnp.dot(h1.astype(MXU_DTYPE), w2_ref[...].astype(MXU_DTYPE),
                preferred_element_type=jnp.float32) + b2_ref[...] + x
    o_ref[...] = _ln(y, g_ref[...], bt_ref[...], eps).astype(o_ref.dtype)


def ffn_layernorm(x, w1, b1, w2, b2, gamma, beta, eps=1e-12):
    """LayerNorm(GELU(x @ w1 + b1) @ w2 + b2 + x); x:[M,H], w1:[H,I] bf16, w2:[I,H] bf16."""
    M, H = x.shape
    I = w1.shape[1]
    tm = _pick_row_tile(M)
    kernel = functools.partial(_ffn_ln_kernel, eps=eps)
    # Explicit VMEM budget: single-buffered bf16 weights + double-buffered x/out tiles +
    # the in-kernel [tm, I] intermediate.
    est = ((H * I + I * H) * w1.dtype.itemsize
           + 2 * 2 * tm * H * 4
           + tm * I * 4 + tm * H * 4)
    return pl.pallas_call(
        kernel,
        grid=(M // tm,),
        in_specs=[
            pl.BlockSpec((tm, H), lambda i: (i, 0)),
            _const_spec((H, I)),
            _const_spec((1, I)),
            _const_spec((I, H)),
            _const_spec((1, H)),
            _const_spec((1, H)),
            _const_spec((1, H)),
        ],
        out_specs=pl.BlockSpec((tm, H), lambda i: (i, 0)),
        out_shape=jax.ShapeDtypeStruct((M, H), ACT_DTYPE),
        compiler_params=pltpu.CompilerParams(
            dimension_semantics=("parallel",),
            vmem_limit_bytes=_vmem_limit_bytes(est)),
    )(x, w1, b1.reshape(1, I), w2, b2.reshape(1, H),
      gamma.reshape(1, H), beta.reshape(1, H))


def _layernorm_kernel(x_ref, g_ref, b_ref, o_ref, *, eps):
    o_ref[...] = _ln(x_ref[...], g_ref[...], b_ref[...], eps).astype(o_ref.dtype)


def layernorm(x, gamma, beta, eps=1e-12):
    """LayerNorm over last dim; x:[M,H]. Row-tiled, parallel grid."""
    M, H = x.shape
    tm = _pick_row_tile(M)
    kernel = functools.partial(_layernorm_kernel, eps=eps)
    return pl.pallas_call(
        kernel,
        grid=(M // tm,),
        in_specs=[
            pl.BlockSpec((tm, H), lambda i: (i, 0)),
            _const_spec((1, H)),
            _const_spec((1, H)),
        ],
        out_specs=pl.BlockSpec((tm, H), lambda i: (i, 0)),
        out_shape=jax.ShapeDtypeStruct((M, H), ACT_DTYPE),
        compiler_params=pltpu.CompilerParams(dimension_semantics=("parallel",)),
    )(x, gamma.reshape(1, H), beta.reshape(1, H))


def _attn_kernel(qkv_ref, m_ref, o_ref, *, num_heads, hidden, dh):
    # One batch element per grid step.  Heads are sliced at static column offsets inside
    # the kernel (no head split/merge transposes, no qkv slice copies in HBM); the context
    # is written back as one lane-dense [S, H] slab.
    qkv = qkv_ref[...].astype(MXU_DTYPE)      # [S, 3H]
    mask = m_ref[0]                           # [1, S] additive mask, broadcasts over queries
    ctx_heads = []
    for h in range(num_heads):                # static unroll over heads
        q = qkv[:, h * dh:(h + 1) * dh]
        k = qkv[:, hidden + h * dh:hidden + (h + 1) * dh]
        v = qkv[:, 2 * hidden + h * dh:2 * hidden + (h + 1) * dh]
        # NOTE: the 1/sqrt(dh) scale is folded into the query columns of wqkv at init.
        s = jax.lax.dot_general(q, k, (((1,), (1,)), ((), ())),
                                preferred_element_type=jnp.float32)   # [S, S] = q @ k.T
        s = s + mask
        s = s - jnp.max(s, axis=-1, keepdims=True)
        p = jnp.exp(s)
        p = p * pl.reciprocal(jnp.sum(p, axis=-1, keepdims=True), approx=True)
        ctx_heads.append(jnp.dot(p.astype(MXU_DTYPE), v,
                                 preferred_element_type=jnp.float32))  # [S, dh]
    o_ref[...] = jnp.concatenate(ctx_heads, axis=-1).astype(o_ref.dtype)


def attention(qkv, add_mask, *, batch, seq, hidden, num_heads):
    """qkv:[B*S, 3H] (fused QKV projection output), add_mask:[B, 1, S] -> ctx:[B*S, H]."""
    M, three_h = qkv.shape
    dh = hidden // num_heads
    kernel = functools.partial(_attn_kernel, num_heads=num_heads, hidden=hidden, dh=dh)
    # TODO(synk): for very long sequences, additionally tile the query axis so the
    # per-step [S, S] score tensors stay within the VMEM budget.
    return pl.pallas_call(
        kernel,
        grid=(batch,),
        in_specs=[
            pl.BlockSpec((seq, three_h), lambda b: (b, 0)),
            pl.BlockSpec((1, 1, seq), lambda b: (b, 0, 0)),
        ],
        out_specs=pl.BlockSpec((seq, hidden), lambda b: (b, 0)),
        out_shape=jax.ShapeDtypeStruct((M, hidden), ACT_DTYPE),
        compiler_params=pltpu.CompilerParams(dimension_semantics=("parallel",)),
    )(qkv, add_mask)


def _pool_cls_kernel(x_ref, pw_ref, pb_ref, cw_ref, cb_ref, o_ref):
    pooled = jnp.tanh(jnp.dot(x_ref[...].astype(MXU_DTYPE), pw_ref[...].astype(MXU_DTYPE),
                              preferred_element_type=jnp.float32) + pb_ref[...])
    logits = jnp.dot(pooled.astype(MXU_DTYPE), cw_ref[...].astype(MXU_DTYPE),
                     preferred_element_type=jnp.float32) + cb_ref[...]
    o_ref[...] = logits.astype(o_ref.dtype)


def pooler_classifier(cls_tok, pool_w, pool_b, cls_w, cls_b):
    """logits = tanh(cls @ pool_w + pool_b) @ cls_w + cls_b, in one kernel."""
    B, H = cls_tok.shape
    N = cls_w.shape[1]
    return pl.pallas_call(
        _pool_cls_kernel,
        grid=(1,),
        in_specs=[
            pl.BlockSpec((B, H), lambda i: (0, 0)),
            _const_spec((H, H)),
            _const_spec((1, H)),
            _const_spec((H, N)),
            _const_spec((1, N)),
        ],
        out_specs=pl.BlockSpec((B, N), lambda i: (0, 0)),
        out_shape=jax.ShapeDtypeStruct((B, N), jnp.float32),
    )(cls_tok, pool_w, pool_b.reshape(1, H), cls_w, cls_b.reshape(1, N))


# ----------------------------------------------------------------------------- model

CFG = dict(
    vocab_size=100,
    hidden=32,
    num_heads=4,
    num_layers=2,
    intermediate=64,
    max_position=16,
    type_vocab=2,
    n_clas=3,
)


def init_params(key, cfg):
    H, I = cfg["hidden"], cfg["intermediate"]
    nH = cfg["num_heads"]
    dh = H // nH
    scale = 1.0 / math.sqrt(dh)

    def normal(k, shape):
        return 0.02 * jax.random.normal(k, shape, dtype=jnp.float32)

    keys = iter(jax.random.split(key, 8 + 12 * cfg["num_layers"]))
    p = {
        "word_emb": normal(next(keys), (cfg["vocab_size"], H)),
        "pos_emb": normal(next(keys), (cfg["max_position"], H)),
        "type_emb": normal(next(keys), (cfg["type_vocab"], H)),
        "emb_ln_g": jnp.ones((H,), jnp.float32),
        "emb_ln_b": jnp.zeros((H,), jnp.float32),
        "pool_w": normal(next(keys), (H, H)).astype(W_DTYPE),
        "pool_b": jnp.zeros((H,), jnp.float32),
        "cls_w": normal(next(keys), (H, cfg["n_clas"])).astype(W_DTYPE),
        "cls_b": jnp.zeros((cfg["n_clas"],), jnp.float32),
        "layers": [],
    }
    for _ in range(cfg["num_layers"]):
        wq = normal(next(keys), (H, H))
        wk = normal(next(keys), (H, H))
        wv = normal(next(keys), (H, H))
        bq = jnp.zeros((H,), jnp.float32)
        bk = jnp.zeros((H,), jnp.float32)
        bv = jnp.zeros((H,), jnp.float32)
        p["layers"].append({
            # Q/K/V fused into one [H, 3H] matmul operand; the 1/sqrt(dh) attention scale
            # is folded into the query columns (and query bias) so the kernel never
            # touches the [S, S] score tensor with an extra multiply.
            "wqkv": jnp.concatenate([wq * scale, wk, wv], axis=1).astype(W_DTYPE),
            "bqkv": jnp.concatenate([bq * scale, bk, bv], axis=0),
            "wo": normal(next(keys), (H, H)).astype(W_DTYPE),
            "bo": jnp.zeros((H,), jnp.float32),
            "ln1_g": jnp.ones((H,), jnp.float32), "ln1_b": jnp.zeros((H,), jnp.float32),
            "w1": normal(next(keys), (H, I)).astype(W_DTYPE),
            "b1": jnp.zeros((I,), jnp.float32),
            "w2": normal(next(keys), (I, H)).astype(W_DTYPE),
            "b2": jnp.zeros((H,), jnp.float32),
            "ln2_g": jnp.ones((H,), jnp.float32), "ln2_b": jnp.zeros((H,), jnp.float32),
        })
    return p


def bert4sc_forward(params, input_ids, attention_mask, cfg):
    """Returns logits [B, n_clas] (BertForSequenceClassification, eval mode)."""
    B, S = input_ids.shape
    H, nH = cfg["hidden"], cfg["num_heads"]
    assert H % nH == 0
    assert S % 8 == 0 or B == 1, "sequence length must be a multiple of 8 (or batch == 1)"

    # --- embeddings (gathers are plain-JAX glue) ---
    pos_ids = jnp.arange(S, dtype=jnp.int32)
    h = (jnp.take(params["word_emb"], input_ids, axis=0)
         + jnp.take(params["pos_emb"], pos_ids, axis=0)[None, :, :]
         + params["type_emb"][0][None, None, :])                 # token_type_ids = 0
    h = h.reshape(B * S, H).astype(ACT_DTYPE)
    h = layernorm(h, params["emb_ln_g"], params["emb_ln_b"])

    # additive attention mask per batch element: (1 - mask) * -1e9, shape [B, 1, S]
    add_mask = ((1.0 - attention_mask.astype(jnp.float32)) * -1e9).reshape(B, 1, S)

    # TODO(synk): at this toy size (H=32, S=8) the forward is pallas_call-overhead bound;
    # whole-encoder-layer fusion into a single kernel would be the only further win, but is
    # unnecessary at real BERT dimensions.
    for lyr in params["layers"]:
        # self-attention: fused QKV projection (one matmul), per-batch attention with
        # in-kernel head slicing and lane-dense [S, H] output, then output projection +
        # residual + LayerNorm fused in one kernel.
        qkv = dense(h, lyr["wqkv"], lyr["bqkv"])                           # [B*S, 3H]
        ctx = attention(qkv, add_mask, batch=B, seq=S, hidden=H, num_heads=nH)  # [B*S, H]
        h = dense_residual_layernorm(ctx, lyr["wo"], lyr["bo"], h,
                                     lyr["ln1_g"], lyr["ln1_b"])
        # feed-forward: W1 + GELU + W2 + residual + LayerNorm fused in one kernel.
        h = ffn_layernorm(h, lyr["w1"], lyr["b1"], lyr["w2"], lyr["b2"],
                          lyr["ln2_g"], lyr["ln2_b"])

    # pooler (tanh) + classifier fused in one kernel
    cls_tok = h.reshape(B, S, H)[:, 0, :]                         # [B, H]
    logits = pooler_classifier(cls_tok, params["pool_w"], params["pool_b"],
                               params["cls_w"], params["cls_b"])  # [B, n_clas]
    return logits


# ----------------------------------------------------------------------------- main

if __name__ == "__main__":
    key = jax.random.PRNGKey(0)
    k_param, k_ids = jax.random.split(key)

    B, S = 2, 8
    params = init_params(k_param, CFG)

    input_ids = jax.random.randint(k_ids, (B, S), 0, CFG["vocab_size"], dtype=jnp.int32)
    # second sequence is padded after position 5
    attention_mask = jnp.stack([
        jnp.ones((S,), jnp.float32),
        (jnp.arange(S) < 5).astype(jnp.float32),
    ], axis=0)

    fwd = jax.jit(functools.partial(bert4sc_forward, cfg=CFG))
    logits = fwd(params, input_ids, attention_mask)
    logits = jax.block_until_ready(logits)
    assert logits.shape == (B, CFG["n_clas"])
    print("KERNEL_OK")
</pallas_src>

<mosaic_0001>
module attributes {stable_mosaic.version = 11 : i64} {
  func.func @_dense_kernel(%arg0: i32, %arg1: memref<8x32xf32, #tpu.memory_space<vmem>>, %arg2: memref<32x96xbf16, #tpu.memory_space<vmem>>, %arg3: memref<1x96xf32, #tpu.memory_space<vmem>>, %arg4: memref<8x96xf32, #tpu.memory_space<vmem>>) attributes {dimension_semantics = [#tpu.dimension_semantics<parallel>], iteration_bounds = array<i64: 2>, scalar_prefetch = 0 : i64, scratch_operands = 0 : i64, tpu.core_type = #tpu.core_type<tc>, window_params = [{transform_indices = @transform_0, window_bounds = array<i64: 8, 32>}, {pipeline_mode = #tpu.pipeline_mode<synchronous>, transform_indices = @transform_1, window_bounds = array<i64: 32, 96>}, {pipeline_mode = #tpu.pipeline_mode<synchronous>, transform_indices = @transform_2, window_bounds = array<i64: 1, 96>}, {transform_indices = @transform_3, window_bounds = array<i64: 8, 96>}]} {
    %c0 = arith.constant 0 : index
    %c0_0 = arith.constant 0 : index
    %0 = vector.load %arg1[%c0, %c0_0] : memref<8x32xf32, #tpu.memory_space<vmem>>, vector<8x32xf32>
    %1 = arith.truncf %0 : vector<8x32xf32> to vector<8x32xbf16>
    %c0_1 = arith.constant 0 : index
    %c0_2 = arith.constant 0 : index
    %2 = vector.load %arg2[%c0_1, %c0_2] : memref<32x96xbf16, #tpu.memory_space<vmem>>, vector<32x96xbf16>
    %cst = arith.constant dense<0.000000e+00> : vector<8x96xf32>
    %3 = tpu.matmul %1, %2, %cst {dimension_numbers = #tpu.dot_dimension_numbers<[1], [0], [0], [1], [0, 0, 1, 1], [], []>} : vector<8x32xbf16>, vector<32x96xbf16>, vector<8x96xf32> -> vector<8x96xf32>
    %c0_3 = arith.constant 0 : index
    %c0_4 = arith.constant 0 : index
    %4 = vector.load %arg3[%c0_3, %c0_4] : memref<1x96xf32, #tpu.memory_space<vmem>>, vector<1x96xf32>
    %5 = vector.broadcast %4 : vector<1x96xf32> to vector<8x96xf32>
    %6 = arith.addf %3, %5 : vector<8x96xf32>
    %c0_5 = arith.constant 0 : index
    %c0_6 = arith.constant 0 : index
    %7 = vector.load %arg4[%c0_5, %c0_6] : memref<8x96xf32, #tpu.memory_space<vmem>>, vector<8x96xf32>
    tpu.vector_store %arg4[%c0_5, %c0_6], %6 {strides = array<i32>} : memref<8x96xf32, #tpu.memory_space<vmem>>, vector<8x96xf32>,
    return
  }
  func.func @transform_0(%arg0: i32) -> (i32, i32) {
    %c0_i32 = arith.constant 0 : i32
    %c0_i32_0 = arith.constant 0 : i32
    return %arg0, %c0_i32 : i32, i32
  }
  func.func @transform_1(%arg0: i32) -> (i32, i32) {
    %c0_i32 = arith.constant 0 : i32
    %c0_i32_0 = arith.constant 0 : i32
    %c0_i32_1 = arith.constant 0 : i32
    return %c0_i32, %c0_i32_0 : i32, i32
  }
  func.func @transform_2(%arg0: i32) -> (i32, i32) {
    %c0_i32 = arith.constant 0 : i32
    %c0_i32_0 = arith.constant 0 : i32
    %c0_i32_1 = arith.constant 0 : i32
    return %c0_i32, %c0_i32_0 : i32, i32
  }
  func.func @transform_3(%arg0: i32) -> (i32, i32) {
    %c0_i32 = arith.constant 0 : i32
    %c0_i32_0 = arith.constant 0 : i32
    return %arg0, %c0_i32 : i32, i32
  }
}

module attributes {stable_mosaic.version = 11 : i64} {
  func.func @_attn_kernel(%arg0: i32, %arg1: memref<8x96xf32, #tpu.memory_space<vmem>>, %arg2: memref<1x1x8xf32, #tpu.memory_space<vmem>>, %arg3: memref<8x32xf32, #tpu.memory_space<vmem>>) attributes {dimension_semantics = [#tpu.dimension_semantics<parallel>], iteration_bounds = array<i64: 2>, scalar_prefetch = 0 : i64, scratch_operands = 0 : i64, tpu.core_type = #tpu.core_type<tc>, window_params = [{transform_indices = @transform_0, window_bounds = array<i64: 8, 96>}, {transform_indices = @transform_1, window_bounds = array<i64: 1, 1, 8>}, {transform_indices = @transform_2, window_bounds = array<i64: 8, 32>}]} {
    %c0 = arith.constant 0 : index
    %c0_0 = arith.constant 0 : index
    %0 = vector.load %arg1[%c0, %c0_0] : memref<8x96xf32, #tpu.memory_space<vmem>>, vector<8x96xf32>
    %1 = arith.truncf %0 : vector<8x96xf32> to vector<8x96xbf16>
    %c0_1 = arith.constant 0 : index
    %c0_2 = arith.constant 0 : index
    %c0_3 = arith.constant 0 : index
    %2 = vector.load %arg2[%c0_1, %c0_2, %c0_3] : memref<1x1x8xf32, #tpu.memory_space<vmem>>, vector<1x1x8xf32>
    %3 = vector.shape_cast %2 : vector<1x1x8xf32> to vector<1x8xf32>
    %4 = vector.extract_strided_slice %1 {offsets = [0, 0], sizes = [8, 8], strides = [1, 1]} : vector<8x96xbf16> to vector<8x8xbf16>
    %5 = vector.extract_strided_slice %1 {offsets = [0, 32], sizes = [8, 8], strides = [1, 1]} : vector<8x96xbf16> to vector<8x8xbf16>
    %6 = vector.extract_strided_slice %1 {offsets = [0, 64], sizes = [8, 8], strides = [1, 1]} : vector<8x96xbf16> to vector<8x8xbf16>
    %cst = arith.constant dense<0.000000e+00> : vector<8x8xf32>
    %7 = tpu.matmul %4, %5, %cst {dimension_numbers = #tpu.dot_dimension_numbers<[1], [1], [0], [0], [0, 0, 1, 0], [], []>} : vector<8x8xbf16>, vector<8x8xbf16>, vector<8x8xf32> -> vector<8x8xf32>
    %8 = vector.broadcast %3 : vector<1x8xf32> to vector<8x8xf32>
    %9 = arith.addf %7, %8 : vector<8x8xf32>
    %cst_4 = arith.constant dense<0xFF800000> : vector<8xf32>
    %10 = vector.multi_reduction <maximumf>, %9, %cst_4 [1] : vector<8x8xf32> to vector<8xf32>
    %11 = vector.shape_cast %10 : vector<8xf32> to vector<8x1xf32>
    %12 = vector.broadcast %11 : vector<8x1xf32> to vector<8x8xf32>
    %13 = arith.subf %9, %12 : vector<8x8xf32>
    %14 = math.exp %13 : vector<8x8xf32>
    %cst_5 = arith.constant dense<0.000000e+00> : vector<8xf32>
    %15 = vector.multi_reduction <add>, %14, %cst_5 [1] : vector<8x8xf32> to vector<8xf32>
    %16 = vector.shape_cast %15 : vector<8xf32> to vector<8x1xf32>
    %17 = tpu.reciprocal %16 {approx = true} : vector<8x1xf32> -> vector<8x1xf32>
    %18 = vector.broadcast %17 : vector<8x1xf32> to vector<8x8xf32>
    %19 = arith.mulf %14, %18 : vector<8x8xf32>
    %20 = arith.truncf %19 : vector<8x8xf32> to vector<8x8xbf16>
    %cst_6 = arith.constant dense<0.000000e+00> : vector<8x8xf32>
    %21 = tpu.matmul %20, %6, %cst_6 {dimension_numbers = #tpu.dot_dimension_numbers<[1], [0], [0], [1], [0, 0, 1, 1], [], []>} : vector<8x8xbf16>, vector<8x8xbf16>, vector<8x8xf32> -> vector<8x8xf32>
    %22 = vector.extract_strided_slice %1 {offsets = [0, 8], sizes = [8, 8], strides = [1, 1]} : vector<8x96xbf16> to vector<8x8xbf16>
    %23 = vector.extract_strided_slice %1 {offsets = [0, 40], sizes = [8, 8], strides = [1, 1]} : vector<8x96xbf16> to vector<8x8xbf16>
    %24 = vector.extract_strided_slice %1 {offsets = [0, 72], sizes = [8, 8], strides = [1, 1]} : vector<8x96xbf16> to vector<8x8xbf16>
    %cst_7 = arith.constant dense<0.000000e+00> : vector<8x8xf32>
    %25 = tpu.matmul %22, %23, %cst_7 {dimension_numbers = #tpu.dot_dimension_numbers<[1], [1], [0], [0], [0, 0, 1, 0], [], []>} : vector<8x8xbf16>, vector<8x8xbf16>, vector<8x8xf32> -> vector<8x8xf32>
    %26 = vector.broadcast %3 : vector<1x8xf32> to vector<8x8xf32>
    %27 = arith.addf %25, %26 : vector<8x8xf32>
    %cst_8 = arith.constant dense<0xFF800000> : vector<8xf32>
    %28 = vector.multi_reduction <maximumf>, %27, %cst_8 [1] : vector<8x8xf32> to vector<8xf32>
    %29 = vector.shape_cast %28 : vector<8xf32> to vector<8x1xf32>
    %30 = vector.broadcast %29 : vector<8x1xf32> to vector<8x8xf32>
    %31 = arith.subf %27, %30 : vector<8x8xf32>
    %32 = math.exp %31 : vector<8x8xf32>
    %cst_9 = arith.constant dense<0.000000e+00> : vector<8xf32>
    %33 = vector.multi_reduction <add>, %32, %cst_9 [1] : vector<8x8xf32> to vector<8xf32>
    %34 = vector.shape_cast %33 : vector<8xf32> to vector<8x1xf32>
    %35 = tpu.reciprocal %34 {approx = true} : vector<8x1xf32> -> vector<8x1xf32>
    %36 = vector.broadcast %35 : vector<8x1xf32> to vector<8x8xf32>
    %37 = arith.mulf %32, %36 : vector<8x8xf32>
    %38 = arith.truncf %37 : vector<8x8xf32> to vector<8x8xbf16>
    %cst_10 = arith.constant dense<0.000000e+00> : vector<8x8xf32>
    %39 = tpu.matmul %38, %24, %cst_10 {dimension_numbers = #tpu.dot_dimension_numbers<[1], [0], [0], [1], [0, 0, 1, 1], [], []>} : vector<8x8xbf16>, vector<8x8xbf16>, vector<8x8xf32> -> vector<8x8xf32>
    %40 = vector.extract_strided_slice %1 {offsets = [0, 16], sizes = [8, 8], strides = [1, 1]} : vector<8x96xbf16> to vector<8x8xbf16>
    %41 = vector.extract_strided_slice %1 {offsets = [0, 48], sizes = [8, 8], strides = [1, 1]} : vector<8x96xbf16> to vector<8x8xbf16>
    %42 = vector.extract_strided_slice %1 {offsets = [0, 80], sizes = [8, 8], strides = [1, 1]} : vector<8x96xbf16> to vector<8x8xbf16>
    %cst_11 = arith.constant dense<0.000000e+00> : vector<8x8xf32>
    %43 = tpu.matmul %40, %41, %cst_11 {dimension_numbers = #tpu.dot_dimension_numbers<[1], [1], [0], [0], [0, 0, 1, 0], [], []>} : vector<8x8xbf16>, vector<8x8xbf16>, vector<8x8xf32> -> vector<8x8xf32>
    %44 = vector.broadcast %3 : vector<1x8xf32> to vector<8x8xf32>
    %45 = arith.addf %43, %44 : vector<8x8xf32>
    %cst_12 = arith.constant dense<0xFF800000> : vector<8xf32>
    %46 = vector.multi_reduction <maximumf>, %45, %cst_12 [1] : vector<8x8xf32> to vector<8xf32>
    %47 = vector.shape_cast %46 : vector<8xf32> to vector<8x1xf32>
    %48 = vector.broadcast %47 : vector<8x1xf32> to vector<8x8xf32>
    %49 = arith.subf %45, %48 : vector<8x8xf32>
    %50 = math.exp %49 : vector<8x8xf32>
    %cst_13 = arith.constant dense<0.000000e+00> : vector<8xf32>
    %51 = vector.multi_reduction <add>, %50, %cst_13 [1] : vector<8x8xf32> to vector<8xf32>
    %52 = vector.shape_cast %51 : vector<8xf32> to vector<8x1xf32>
    %53 = tpu.reciprocal %52 {approx = true} : vector<8x1xf32> -> vector<8x1xf32>
    %54 = vector.broadcast %53 : vector<8x1xf32> to vector<8x8xf32>
    %55 = arith.mulf %50, %54 : vector<8x8xf32>
    %56 = arith.truncf %55 : vector<8x8xf32> to vector<8x8xbf16>
    %cst_14 = arith.constant dense<0.000000e+00> : vector<8x8xf32>
    %57 = tpu.matmul %56, %42, %cst_14 {dimension_numbers = #tpu.dot_dimension_numbers<[1], [0], [0], [1], [0, 0, 1, 1], [], []>} : vector<8x8xbf16>, vector<8x8xbf16>, vector<8x8xf32> -> vector<8x8xf32>
    %58 = vector.extract_strided_slice %1 {offsets = [0, 24], sizes = [8, 8], strides = [1, 1]} : vector<8x96xbf16> to vector<8x8xbf16>
    %59 = vector.extract_strided_slice %1 {offsets = [0, 56], sizes = [8, 8], strides = [1, 1]} : vector<8x96xbf16> to vector<8x8xbf16>
    %60 = vector.extract_strided_slice %1 {offsets = [0, 88], sizes = [8, 8], strides = [1, 1]} : vector<8x96xbf16> to vector<8x8xbf16>
    %cst_15 = arith.constant dense<0.000000e+00> : vector<8x8xf32>
    %61 = tpu.matmul %58, %59, %cst_15 {dimension_numbers = #tpu.dot_dimension_numbers<[1], [1], [0], [0], [0, 0, 1, 0], [], []>} : vector<8x8xbf16>, vector<8x8xbf16>, vector<8x8xf32> -> vector<8x8xf32>
    %62 = vector.broadcast %3 : vector<1x8xf32> to vector<8x8xf32>
    %63 = arith.addf %61, %62 : vector<8x8xf32>
    %cst_16 = arith.constant dense<0xFF800000> : vector<8xf32>
    %64 = vector.multi_reduction <maximumf>, %63, %cst_16 [1] : vector<8x8xf32> to vector<8xf32>
    %65 = vector.shape_cast %64 : vector<8xf32> to vector<8x1xf32>
    %66 = vector.broadcast %65 : vector<8x1xf32> to vector<8x8xf32>
    %67 = arith.subf %63, %66 : vector<8x8xf32>
    %68 = math.exp %67 : vector<8x8xf32>
    %cst_17 = arith.constant dense<0.000000e+00> : vector<8xf32>
    %69 = vector.multi_reduction <add>, %68, %cst_17 [1] : vector<8x8xf32> to vector<8xf32>
    %70 = vector.shape_cast %69 : vector<8xf32> to vector<8x1xf32>
    %71 = tpu.reciprocal %70 {approx = true} : vector<8x1xf32> -> vector<8x1xf32>
    %72 = vector.broadcast %71 : vector<8x1xf32> to vector<8x8xf32>
    %73 = arith.mulf %68, %72 : vector<8x8xf32>
    %74 = arith.truncf %73 : vector<8x8xf32> to vector<8x8xbf16>
    %cst_18 = arith.constant dense<0.000000e+00> : vector<8x8xf32>
    %75 = tpu.matmul %74, %60, %cst_18 {dimension_numbers = #tpu.dot_dimension_numbers<[1], [0], [0], [1], [0, 0, 1, 1], [], []>} : vector<8x8xbf16>, vector<8x8xbf16>, vector<8x8xf32> -> vector<8x8xf32>
    %76 = tpu.concatenate %21, %39, %57, %75 in 1 : vector<8x8xf32>, vector<8x8xf32>, vector<8x8xf32>, vector<8x8xf32> -> vector<8x32xf32>
    %c0_19 = arith.constant 0 : index
    %c0_20 = arith.constant 0 : index
    %77 = vector.load %arg3[%c0_19, %c0_20] : memref<8x32xf32, #tpu.memory_space<vmem>>, vector<8x32xf32>
    tpu.vector_store %arg3[%c0_19, %c0_20], %76 {strides = array<i32>} : memref<8x32xf32, #tpu.memory_space<vmem>>, vector<8x32xf32>,
    return
  }
  func.func @transform_0(%arg0: i32) -> (i32, i32) {
    %c0_i32 = arith.constant 0 : i32
    %c0_i32_0 = arith.constant 0 : i32
    return %arg0, %c0_i32 : i32, i32
  }
  func.func @transform_1(%arg0: i32) -> (i32, i32, i32) {
    %c0_i32 = arith.constant 0 : i32
    %c0_i32_0 = arith.constant 0 : i32
    %c0_i32_1 = arith.constant 0 : i32
    return %arg0, %c0_i32, %c0_i32_0 : i32, i32, i32
  }
  func.func @transform_2(%arg0: i32) -> (i32, i32) {
    %c0_i32 = arith.constant 0 : i32
    %c0_i32_0 = arith.constant 0 : i32
    return %arg0, %c0_i32 : i32, i32
  }
}

module attributes {stable_mosaic.version = 11 : i64} {
  func.func @_layernorm_kernel(%arg0: i32, %arg1: memref<8x32xf32, #tpu.memory_space<vmem>>, %arg2: memref<1x32xf32, #tpu.memory_space<vmem>>, %arg3: memref<1x32xf32, #tpu.memory_space<vmem>>, %arg4: memref<8x32xf32, #tpu.memory_space<vmem>>) attributes {dimension_semantics = [#tpu.dimension_semantics<parallel>], iteration_bounds = array<i64: 2>, scalar_prefetch = 0 : i64, scratch_operands = 0 : i64, tpu.core_type = #tpu.core_type<tc>, window_params = [{transform_indices = @transform_0, window_bounds = array<i64: 8, 32>}, {pipeline_mode = #tpu.pipeline_mode<synchronous>, transform_indices = @transform_1, window_bounds = array<i64: 1, 32>}, {pipeline_mode = #tpu.pipeline_mode<synchronous>, transform_indices = @transform_2, window_bounds = array<i64: 1, 32>}, {transform_indices = @transform_3, window_bounds = array<i64: 8, 32>}]} {
    %c0 = arith.constant 0 : index
    %c0_0 = arith.constant 0 : index
    %0 = vector.load %arg1[%c0, %c0_0] : memref<8x32xf32, #tpu.memory_space<vmem>>, vector<8x32xf32>
    %c0_1 = arith.constant 0 : index
    %c0_2 = arith.constant 0 : index
    %1 = vector.load %arg2[%c0_1, %c0_2] : memref<1x32xf32, #tpu.memory_space<vmem>>, vector<1x32xf32>
    %c0_3 = arith.constant 0 : index
    %c0_4 = arith.constant 0 : index
    %2 = vector.load %arg3[%c0_3, %c0_4] : memref<1x32xf32, #tpu.memory_space<vmem>>, vector<1x32xf32>
    %cst = arith.constant dense<0.000000e+00> : vector<8xf32>
    %3 = vector.multi_reduction <add>, %0, %cst [1] : vector<8x32xf32> to vector<8xf32>
    %4 = vector.shape_cast %3 : vector<8xf32> to vector<8x1xf32>
    %cst_5 = arith.constant 3.200000e+01 : f32
    %5 = vector.broadcast %cst_5 : f32 to vector<8x1xf32>
    %6 = arith.divf %4, %5 : vector<8x1xf32>
    %7 = vector.broadcast %6 : vector<8x1xf32> to vector<8x32xf32>
    %8 = arith.subf %0, %7 : vector<8x32xf32>
    %9 = vector.broadcast %6 : vector<8x1xf32> to vector<8x32xf32>
    %10 = arith.subf %0, %9 : vector<8x32xf32>
    %11 = arith.mulf %8, %10 : vector<8x32xf32>
    %cst_6 = arith.constant dense<0.000000e+00> : vector<8xf32>
    %12 = vector.multi_reduction <add>, %11, %cst_6 [1] : vector<8x32xf32> to vector<8xf32>
    %13 = vector.shape_cast %12 : vector<8xf32> to vector<8x1xf32>
    %cst_7 = arith.constant 3.200000e+01 : f32
    %14 = vector.broadcast %cst_7 : f32 to vector<8x1xf32>
    %15 = arith.divf %13, %14 : vector<8x1xf32>
    %16 = vector.broadcast %6 : vector<8x1xf32> to vector<8x32xf32>
    %17 = arith.subf %0, %16 : vector<8x32xf32>
    %cst_8 = arith.constant 9.99999996E-13 : f32
    %18 = vector.broadcast %cst_8 : f32 to vector<8x1xf32>
    %19 = arith.addf %15, %18 : vector<8x1xf32>
    %20 = math.rsqrt %19 : vector<8x1xf32>
    %21 = vector.broadcast %20 : vector<8x1xf32> to vector<8x32xf32>
    %22 = arith.mulf %17, %21 : vector<8x32xf32>
    %23 = vector.broadcast %1 : vector<1x32xf32> to vector<8x32xf32>
    %24 = arith.mulf %22, %23 : vector<8x32xf32>
    %25 = vector.broadcast %2 : vector<1x32xf32> to vector<8x32xf32>
    %26 = arith.addf %24, %25 : vector<8x32xf32>
    %c0_9 = arith.constant 0 : index
    %c0_10 = arith.constant 0 : index
    %27 = vector.load %arg4[%c0_9, %c0_10] : memref<8x32xf32, #tpu.memory_space<vmem>>, vector<8x32xf32>
    tpu.vector_store %arg4[%c0_9, %c0_10], %26 {strides = array<i32>} : memref<8x32xf32, #tpu.memory_space<vmem>>, vector<8x32xf32>,
    return
  }
  func.func @transform_0(%arg0: i32) -> (i32, i32) {
    %c0_i32 = arith.constant 0 : i32
    %c0_i32_0 = arith.constant 0 : i32
    return %arg0, %c0_i32 : i32, i32
  }
  func.func @transform_1(%arg0: i32) -> (i32, i32) {
    %c0_i32 = arith.constant 0 : i32
    %c0_i32_0 = arith.constant 0 : i32
    %c0_i32_1 = arith.constant 0 : i32
    return %c0_i32, %c0_i32_0 : i32, i32
  }
  func.func @transform_2(%arg0: i32) -> (i32, i32) {
    %c0_i32 = arith.constant 0 : i32
    %c0_i32_0 = arith.constant 0 : i32
    %c0_i32_1 = arith.constant 0 : i32
    return %c0_i32, %c0_i32_0 : i32, i32
  }
  func.func @transform_3(%arg0: i32) -> (i32, i32) {
    %c0_i32 = arith.constant 0 : i32
    %c0_i32_0 = arith.constant 0 : i32
    return %arg0, %c0_i32 : i32, i32
  }
}

module attributes {stable_mosaic.version = 11 : i64} {
  func.func @_dense_res_ln_kernel(%arg0: i32, %arg1: memref<8x32xf32, #tpu.memory_space<vmem>>, %arg2: memref<32x32xbf16, #tpu.memory_space<vmem>>, %arg3: memref<1x32xf32, #tpu.memory_space<vmem>>, %arg4: memref<8x32xf32, #tpu.memory_space<vmem>>, %arg5: memref<1x32xf32, #tpu.memory_space<vmem>>, %arg6: memref<1x32xf32, #tpu.memory_space<vmem>>, %arg7: memref<8x32xf32, #tpu.memory_space<vmem>>) attributes {dimension_semantics = [#tpu.dimension_semantics<parallel>], iteration_bounds = array<i64: 2>, scalar_prefetch = 0 : i64, scratch_operands = 0 : i64, tpu.core_type = #tpu.core_type<tc>, window_params = [{transform_indices = @transform_0, window_bounds = array<i64: 8, 32>}, {pipeline_mode = #tpu.pipeline_mode<synchronous>, transform_indices = @transform_1, window_bounds = array<i64: 32, 32>}, {pipeline_mode = #tpu.pipeline_mode<synchronous>, transform_indices = @transform_2, window_bounds = array<i64: 1, 32>}, {transform_indices = @transform_3, window_bounds = array<i64: 8, 32>}, {pipeline_mode = #tpu.pipeline_mode<synchronous>, transform_indices = @transform_4, window_bounds = array<i64: 1, 32>}, {pipeline_mode = #tpu.pipeline_mode<synchronous>, transform_indices = @transform_5, window_bounds = array<i64: 1, 32>}, {transform_indices = @transform_6, window_bounds = array<i64: 8, 32>}]} {
    %c0 = arith.constant 0 : index
    %c0_0 = arith.constant 0 : index
    %0 = vector.load %arg1[%c0, %c0_0] : memref<8x32xf32, #tpu.memory_space<vmem>>, vector<8x32xf32>
    %1 = arith.truncf %0 : vector<8x32xf32> to vector<8x32xbf16>
    %c0_1 = arith.constant 0 : index
    %c0_2 = arith.constant 0 : index
    %2 = vector.load %arg2[%c0_1, %c0_2] : memref<32x32xbf16, #tpu.memory_space<vmem>>, vector<32x32xbf16>
    %cst = arith.constant dense<0.000000e+00> : vector<8x32xf32>
    %3 = tpu.matmul %1, %2, %cst {dimension_numbers = #tpu.dot_dimension_numbers<[1], [0], [0], [1], [0, 0, 1, 1], [], []>} : vector<8x32xbf16>, vector<32x32xbf16>, vector<8x32xf32> -> vector<8x32xf32>
    %c0_3 = arith.constant 0 : index
    %c0_4 = arith.constant 0 : index
    %4 = vector.load %arg3[%c0_3, %c0_4] : memref<1x32xf32, #tpu.memory_space<vmem>>, vector<1x32xf32>
    %5 = vector.broadcast %4 : vector<1x32xf32> to vector<8x32xf32>
    %6 = arith.addf %3, %5 : vector<8x32xf32>
    %c0_5 = arith.constant 0 : index
    %c0_6 = arith.constant 0 : index
    %7 = vector.load %arg4[%c0_5, %c0_6] : memref<8x32xf32, #tpu.memory_space<vmem>>, vector<8x32xf32>
    %8 = arith.addf %6, %7 : vector<8x32xf32>
    %c0_7 = arith.constant 0 : index
    %c0_8 = arith.constant 0 : index
    %9 = vector.load %arg5[%c0_7, %c0_8] : memref<1x32xf32, #tpu.memory_space<vmem>>, vector<1x32xf32>
    %c0_9 = arith.constant 0 : index
    %c0_10 = arith.constant 0 : index
    %10 = vector.load %arg6[%c0_9, %c0_10] : memref<1x32xf32, #tpu.memory_space<vmem>>, vector<1x32xf32>
    %cst_11 = arith.constant dense<0.000000e+00> : vector<8xf32>
    %11 = vector.multi_reduction <add>, %8, %cst_11 [1] : vector<8x32xf32> to vector<8xf32>
    %12 = vector.shape_cast %11 : vector<8xf32> to vector<8x1xf32>
    %cst_12 = arith.constant 3.200000e+01 : f32
    %13 = vector.broadcast %cst_12 : f32 to vector<8x1xf32>
    %14 = arith.divf %12, %13 : vector<8x1xf32>
    %15 = vector.broadcast %14 : vector<8x1xf32> to vector<8x32xf32>
    %16 = arith.subf %8, %15 : vector<8x32xf32>
    %17 = vector.broadcast %14 : vector<8x1xf32> to vector<8x32xf32>
    %18 = arith.subf %8, %17 : vector<8x32xf32>
    %19 = arith.mulf %16, %18 : vector<8x32xf32>
    %cst_13 = arith.constant dense<0.000000e+00> : vector<8xf32>
    %20 = vector.multi_reduction <add>, %19, %cst_13 [1] : vector<8x32xf32> to vector<8xf32>
    %21 = vector.shape_cast %20 : vector<8xf32> to vector<8x1xf32>
    %cst_14 = arith.constant 3.200000e+01 : f32
    %22 = vector.broadcast %cst_14 : f32 to vector<8x1xf32>
    %23 = arith.divf %21, %22 : vector<8x1xf32>
    %24 = vector.broadcast %14 : vector<8x1xf32> to vector<8x32xf32>
    %25 = arith.subf %8, %24 : vector<8x32xf32>
    %cst_15 = arith.constant 9.99999996E-13 : f32
    %26 = vector.broadcast %cst_15 : f32 to vector<8x1xf32>
    %27 = arith.addf %23, %26 : vector<8x1xf32>
    %28 = math.rsqrt %27 : vector<8x1xf32>
    %29 = vector.broadcast %28 : vector<8x1xf32> to vector<8x32xf32>
    %30 = arith.mulf %25, %29 : vector<8x32xf32>
    %31 = vector.broadcast %9 : vector<1x32xf32> to vector<8x32xf32>
    %32 = arith.mulf %30, %31 : vector<8x32xf32>
    %33 = vector.broadcast %10 : vector<1x32xf32> to vector<8x32xf32>
    %34 = arith.addf %32, %33 : vector<8x32xf32>
    %c0_16 = arith.constant 0 : index
    %c0_17 = arith.constant 0 : index
    %35 = vector.load %arg7[%c0_16, %c0_17] : memref<8x32xf32, #tpu.memory_space<vmem>>, vector<8x32xf32>
    tpu.vector_store %arg7[%c0_16, %c0_17], %34 {strides = array<i32>} : memref<8x32xf32, #tpu.memory_space<vmem>>, vector<8x32xf32>,
    return
  }
  func.func @transform_0(%arg0: i32) -> (i32, i32) {
    %c0_i32 = arith.constant 0 : i32
    %c0_i32_0 = arith.constant 0 : i32
    return %arg0, %c0_i32 : i32, i32
  }
  func.func @transform_1(%arg0: i32) -> (i32, i32) {
    %c0_i32 = arith.constant 0 : i32
    %c0_i32_0 = arith.constant 0 : i32
    %c0_i32_1 = arith.constant 0 : i32
    return %c0_i32, %c0_i32_0 : i32, i32
  }
  func.func @transform_2(%arg0: i32) -> (i32, i32) {
    %c0_i32 = arith.constant 0 : i32
    %c0_i32_0 = arith.constant 0 : i32
    %c0_i32_1 = arith.constant 0 : i32
    return %c0_i32, %c0_i32_0 : i32, i32
  }
  func.func @transform_3(%arg0: i32) -> (i32, i32) {
    %c0_i32 = arith.constant 0 : i32
    %c0_i32_0 = arith.constant 0 : i32
    return %arg0, %c0_i32 : i32, i32
  }
  func.func @transform_4(%arg0: i32) -> (i32, i32) {
    %c0_i32 = arith.constant 0 : i32
    %c0_i32_0 = arith.constant 0 : i32
    %c0_i32_1 = arith.constant 0 : i32
    return %c0_i32, %c0_i32_0 : i32, i32
  }
  func.func @transform_5(%arg0: i32) -> (i32, i32) {
    %c0_i32 = arith.constant 0 : i32
    %c0_i32_0 = arith.constant 0 : i32
    %c0_i32_1 = arith.constant 0 : i32
    return %c0_i32, %c0_i32_0 : i32, i32
  }
  func.func @transform_6(%arg0: i32) -> (i32, i32) {
    %c0_i32 = arith.constant 0 : i32
    %c0_i32_0 = arith.constant 0 : i32
    return %arg0, %c0_i32 : i32, i32
  }
}

module attributes {stable_mosaic.version = 11 : i64} {
  func.func @_pool_cls_kernel(%arg0: i32, %arg1: memref<2x32xf32, #tpu.memory_space<vmem>>, %arg2: memref<32x32xbf16, #tpu.memory_space<vmem>>, %arg3: memref<1x32xf32, #tpu.memory_space<vmem>>, %arg4: memref<32x3xbf16, #tpu.memory_space<vmem>>, %arg5: memref<1x3xf32, #tpu.memory_space<vmem>>, %arg6: memref<2x3xf32, #tpu.memory_space<vmem>>) attributes {dimension_semantics = [#tpu.dimension_semantics<arbitrary>], iteration_bounds = array<i64: 1>, scalar_prefetch = 0 : i64, scratch_operands = 0 : i64, tpu.core_type = #tpu.core_type<tc>, window_params = [{pipeline_mode = #tpu.pipeline_mode<synchronous>, transform_indices = @transform_0, window_bounds = array<i64: 2, 32>}, {pipeline_mode = #tpu.pipeline_mode<synchronous>, transform_indices = @transform_1, window_bounds = array<i64: 32, 32>}, {pipeline_mode = #tpu.pipeline_mode<synchronous>, transform_indices = @transform_2, window_bounds = array<i64: 1, 32>}, {pipeline_mode = #tpu.pipeline_mode<synchronous>, transform_indices = @transform_3, window_bounds = array<i64: 32, 3>}, {pipeline_mode = #tpu.pipeline_mode<synchronous>, transform_indices = @transform_4, window_bounds = array<i64: 1, 3>}, {pipeline_mode = #tpu.pipeline_mode<synchronous>, transform_indices = @transform_5, window_bounds = array<i64: 2, 3>}]} {
    %c0 = arith.constant 0 : index
    %c0_0 = arith.constant 0 : index
    %0 = vector.load %arg1[%c0, %c0_0] : memref<2x32xf32, #tpu.memory_space<vmem>>, vector<2x32xf32>
    %1 = arith.truncf %0 : vector<2x32xf32> to vector<2x32xbf16>
    %c0_1 = arith.constant 0 : index
    %c0_2 = arith.constant 0 : index
    %2 = vector.load %arg2[%c0_1, %c0_2] : memref<32x32xbf16, #tpu.memory_space<vmem>>, vector<32x32xbf16>
    %cst = arith.constant dense<0.000000e+00> : vector<2x32xf32>
    %3 = tpu.matmul %1, %2, %cst {dimension_numbers = #tpu.dot_dimension_numbers<[1], [0], [0], [1], [0, 0, 1, 1], [], []>} : vector<2x32xbf16>, vector<32x32xbf16>, vector<2x32xf32> -> vector<2x32xf32>
    %c0_3 = arith.constant 0 : index
    %c0_4 = arith.constant 0 : index
    %4 = vector.load %arg3[%c0_3, %c0_4] : memref<1x32xf32, #tpu.memory_space<vmem>>, vector<1x32xf32>
    %5 = vector.broadcast %4 : vector<1x32xf32> to vector<2x32xf32>
    %6 = arith.addf %3, %5 : vector<2x32xf32>
    %7 = math.tanh %6 : vector<2x32xf32>
    %8 = arith.truncf %7 : vector<2x32xf32> to vector<2x32xbf16>
    %c0_5 = arith.constant 0 : index
    %c0_6 = arith.constant 0 : index
    %9 = vector.load %arg4[%c0_5, %c0_6] : memref<32x3xbf16, #tpu.memory_space<vmem>>, vector<32x3xbf16>
    %cst_7 = arith.constant dense<0.000000e+00> : vector<2x3xf32>
    %10 = tpu.matmul %8, %9, %cst_7 {dimension_numbers = #tpu.dot_dimension_numbers<[1], [0], [0], [1], [0, 0, 1, 1], [], []>} : vector<2x32xbf16>, vector<32x3xbf16>, vector<2x3xf32> -> vector<2x3xf32>
    %c0_8 = arith.constant 0 : index
    %c0_9 = arith.constant 0 : index
    %11 = vector.load %arg5[%c0_8, %c0_9] : memref<1x3xf32, #tpu.memory_space<vmem>>, vector<1x3xf32>
    %12 = vector.broadcast %11 : vector<1x3xf32> to vector<2x3xf32>
    %13 = arith.addf %10, %12 : vector<2x3xf32>
    %c0_10 = arith.constant 0 : index
    %c0_11 = arith.constant 0 : index
    %14 = vector.load %arg6[%c0_10, %c0_11] : memref<2x3xf32, #tpu.memory_space<vmem>>, vector<2x3xf32>
    tpu.vector_store %arg6[%c0_10, %c0_11], %13 {strides = array<i32>} : memref<2x3xf32, #tpu.memory_space<vmem>>, vector<2x3xf32>,
    return
  }
  func.func @transform_0(%arg0: i32) -> (i32, i32) {
    %c0_i32 = arith.constant 0 : i32
    %c0_i32_0 = arith.constant 0 : i32
    %c0_i32_1 = arith.constant 0 : i32
    return %c0_i32, %c0_i32_0 : i32, i32
  }
  func.func @transform_1(%arg0: i32) -> (i32, i32) {
    %c0_i32 = arith.constant 0 : i32
    %c0_i32_0 = arith.constant 0 : i32
    %c0_i32_1 = arith.constant 0 : i32
    return %c0_i32, %c0_i32_0 : i32, i32
  }
  func.func @transform_2(%arg0: i32) -> (i32, i32) {
    %c0_i32 = arith.constant 0 : i32
    %c0_i32_0 = arith.constant 0 : i32
    %c0_i32_1 = arith.constant 0 : i32
    return %c0_i32, %c0_i32_0 : i32, i32
  }
  func.func @transform_3(%arg0: i32) -> (i32, i32) {
    %c0_i32 = arith.constant 0 : i32
    %c0_i32_0 = arith.constant 0 : i32
    %c0_i32_1 = arith.constant 0 : i32
    return %c0_i32, %c0_i32_0 : i32, i32
  }
  func.func @transform_4(%arg0: i32) -> (i32, i32) {
    %c0_i32 = arith.constant 0 : i32
    %c0_i32_0 = arith.constant 0 : i32
    %c0_i32_1 = arith.constant 0 : i32
    return %c0_i32, %c0_i32_0 : i32, i32
  }
  func.func @transform_5(%arg0: i32) -> (i32, i32) {
    %c0_i32 = arith.constant 0 : i32
    %c0_i32_0 = arith.constant 0 : i32
    %c0_i32_1 = arith.constant 0 : i32
    return %c0_i32, %c0_i32_0 : i32, i32
  }
}

module attributes {stable_mosaic.version = 11 : i64} {
  func.func @_ffn_ln_kernel(%arg0: i32, %arg1: memref<8x32xf32, #tpu.memory_space<vmem>>, %arg2: memref<32x64xbf16, #tpu.memory_space<vmem>>, %arg3: memref<1x64xf32, #tpu.memory_space<vmem>>, %arg4: memref<64x32xbf16, #tpu.memory_space<vmem>>, %arg5: memref<1x32xf32, #tpu.memory_space<vmem>>, %arg6: memref<1x32xf32, #tpu.memory_space<vmem>>, %arg7: memref<1x32xf32, #tpu.memory_space<vmem>>, %arg8: memref<8x32xf32, #tpu.memory_space<vmem>>) attributes {dimension_semantics = [#tpu.dimension_semantics<parallel>], iteration_bounds = array<i64: 2>, scalar_prefetch = 0 : i64, scratch_operands = 0 : i64, tpu.core_type = #tpu.core_type<tc>, window_params = [{transform_indices = @transform_0, window_bounds = array<i64: 8, 32>}, {pipeline_mode = #tpu.pipeline_mode<synchronous>, transform_indices = @transform_1, window_bounds = array<i64: 32, 64>}, {pipeline_mode = #tpu.pipeline_mode<synchronous>, transform_indices = @transform_2, window_bounds = array<i64: 1, 64>}, {pipeline_mode = #tpu.pipeline_mode<synchronous>, transform_indices = @transform_3, window_bounds = array<i64: 64, 32>}, {pipeline_mode = #tpu.pipeline_mode<synchronous>, transform_indices = @transform_4, window_bounds = array<i64: 1, 32>}, {pipeline_mode = #tpu.pipeline_mode<synchronous>, transform_indices = @transform_5, window_bounds = array<i64: 1, 32>}, {pipeline_mode = #tpu.pipeline_mode<synchronous>, transform_indices = @transform_6, window_bounds = array<i64: 1, 32>}, {transform_indices = @transform_7, window_bounds = array<i64: 8, 32>}]} {
    %c0 = arith.constant 0 : index
    %c0_0 = arith.constant 0 : index
    %0 = vector.load %arg1[%c0, %c0_0] : memref<8x32xf32, #tpu.memory_space<vmem>>, vector<8x32xf32>
    %1 = arith.truncf %0 : vector<8x32xf32> to vector<8x32xbf16>
    %c0_1 = arith.constant 0 : index
    %c0_2 = arith.constant 0 : index
    %2 = vector.load %arg2[%c0_1, %c0_2] : memref<32x64xbf16, #tpu.memory_space<vmem>>, vector<32x64xbf16>
    %cst = arith.constant dense<0.000000e+00> : vector<8x64xf32>
    %3 = tpu.matmul %1, %2, %cst {dimension_numbers = #tpu.dot_dimension_numbers<[1], [0], [0], [1], [0, 0, 1, 1], [], []>} : vector<8x32xbf16>, vector<32x64xbf16>, vector<8x64xf32> -> vector<8x64xf32>
    %c0_3 = arith.constant 0 : index
    %c0_4 = arith.constant 0 : index
    %4 = vector.load %arg3[%c0_3, %c0_4] : memref<1x64xf32, #tpu.memory_space<vmem>>, vector<1x64xf32>
    %5 = vector.broadcast %4 : vector<1x64xf32> to vector<8x64xf32>
    %6 = arith.addf %3, %5 : vector<8x64xf32>
    %cst_5 = arith.constant 5.000000e-01 : f32
    %7 = vector.broadcast %cst_5 : f32 to vector<8x64xf32>
    %8 = arith.mulf %7, %6 : vector<8x64xf32>
    %cst_6 = arith.constant 4.471500e-02 : f32
    %9 = vector.broadcast %cst_6 : f32 to vector<8x64xf32>
    %10 = arith.mulf %9, %6 : vector<8x64xf32>
    %11 = arith.mulf %10, %6 : vector<8x64xf32>
    %12 = arith.mulf %11, %6 : vector<8x64xf32>
    %13 = arith.addf %6, %12 : vector<8x64xf32>
    %cst_7 = arith.constant 0.797884583 : f32
    %14 = vector.broadcast %cst_7 : f32 to vector<8x64xf32>
    %15 = arith.mulf %14, %13 : vector<8x64xf32>
    %16 = math.tanh %15 : vector<8x64xf32>
    %cst_8 = arith.constant 1.000000e+00 : f32
    %17 = vector.broadcast %cst_8 : f32 to vector<8x64xf32>
    %18 = arith.addf %17, %16 : vector<8x64xf32>
    %19 = arith.mulf %8, %18 : vector<8x64xf32>
    %20 = arith.truncf %19 : vector<8x64xf32> to vector<8x64xbf16>
    %c0_9 = arith.constant 0 : index
    %c0_10 = arith.constant 0 : index
    %21 = vector.load %arg4[%c0_9, %c0_10] : memref<64x32xbf16, #tpu.memory_space<vmem>>, vector<64x32xbf16>
    %cst_11 = arith.constant dense<0.000000e+00> : vector<8x32xf32>
    %22 = tpu.matmul %20, %21, %cst_11 {dimension_numbers = #tpu.dot_dimension_numbers<[1], [0], [0], [1], [0, 0, 1, 1], [], []>} : vector<8x64xbf16>, vector<64x32xbf16>, vector<8x32xf32> -> vector<8x32xf32>
    %c0_12 = arith.constant 0 : index
    %c0_13 = arith.constant 0 : index
    %23 = vector.load %arg5[%c0_12, %c0_13] : memref<1x32xf32, #tpu.memory_space<vmem>>, vector<1x32xf32>
    %24 = vector.broadcast %23 : vector<1x32xf32> to vector<8x32xf32>
    %25 = arith.addf %22, %24 : vector<8x32xf32>
    %26 = arith.addf %25, %0 : vector<8x32xf32>
    %c0_14 = arith.constant 0 : index
    %c0_15 = arith.constant 0 : index
    %27 = vector.load %arg6[%c0_14, %c0_15] : memref<1x32xf32, #tpu.memory_space<vmem>>, vector<1x32xf32>
    %c0_16 = arith.constant 0 : index
    %c0_17 = arith.constant 0 : index
    %28 = vector.load %arg7[%c0_16, %c0_17] : memref<1x32xf32, #tpu.memory_space<vmem>>, vector<1x32xf32>
    %cst_18 = arith.constant dense<0.000000e+00> : vector<8xf32>
    %29 = vector.multi_reduction <add>, %26, %cst_18 [1] : vector<8x32xf32> to vector<8xf32>
    %30 = vector.shape_cast %29 : vector<8xf32> to vector<8x1xf32>
    %cst_19 = arith.constant 3.200000e+01 : f32
    %31 = vector.broadcast %cst_19 : f32 to vector<8x1xf32>
    %32 = arith.divf %30, %31 : vector<8x1xf32>
    %33 = vector.broadcast %32 : vector<8x1xf32> to vector<8x32xf32>
    %34 = arith.subf %26, %33 : vector<8x32xf32>
    %35 = vector.broadcast %32 : vector<8x1xf32> to vector<8x32xf32>
    %36 = arith.subf %26, %35 : vector<8x32xf32>
    %37 = arith.mulf %34, %36 : vector<8x32xf32>
    %cst_20 = arith.constant dense<0.000000e+00> : vector<8xf32>
    %38 = vector.multi_reduction <add>, %37, %cst_20 [1] : vector<8x32xf32> to vector<8xf32>
    %39 = vector.shape_cast %38 : vector<8xf32> to vector<8x1xf32>
    %cst_21 = arith.constant 3.200000e+01 : f32
    %40 = vector.broadcast %cst_21 : f32 to vector<8x1xf32>
    %41 = arith.divf %39, %40 : vector<8x1xf32>
    %42 = vector.broadcast %32 : vector<8x1xf32> to vector<8x32xf32>
    %43 = arith.subf %26, %42 : vector<8x32xf32>
    %cst_22 = arith.constant 9.99999996E-13 : f32
    %44 = vector.broadcast %cst_22 : f32 to vector<8x1xf32>
    %45 = arith.addf %41, %44 : vector<8x1xf32>
    %46 = math.rsqrt %45 : vector<8x1xf32>
    %47 = vector.broadcast %46 : vector<8x1xf32> to vector<8x32xf32>
    %48 = arith.mulf %43, %47 : vector<8x32xf32>
    %49 = vector.broadcast %27 : vector<1x32xf32> to vector<8x32xf32>
    %50 = arith.mulf %48, %49 : vector<8x32xf32>
    %51 = vector.broadcast %28 : vector<1x32xf32> to vector<8x32xf32>
    %52 = arith.addf %50, %51 : vector<8x32xf32>
    %c0_23 = arith.constant 0 : index
    %c0_24 = arith.constant 0 : index
    %53 = vector.load %arg8[%c0_23, %c0_24] : memref<8x32xf32, #tpu.memory_space<vmem>>, vector<8x32xf32>
    tpu.vector_store %arg8[%c0_23, %c0_24], %52 {strides = array<i32>} : memref<8x32xf32, #tpu.memory_space<vmem>>, vector<8x32xf32>,
    return
  }
  func.func @transform_0(%arg0: i32) -> (i32, i32) {
    %c0_i32 = arith.constant 0 : i32
    %c0_i32_0 = arith.constant 0 : i32
    return %arg0, %c0_i32 : i32, i32
  }
  func.func @transform_1(%arg0: i32) -> (i32, i32) {
    %c0_i32 = arith.constant 0 : i32
    %c0_i32_0 = arith.constant 0 : i32
    %c0_i32_1 = arith.constant 0 : i32
    return %c0_i32, %c0_i32_0 : i32, i32
  }
  func.func @transform_2(%arg0: i32) -> (i32, i32) {
    %c0_i32 = arith.constant 0 : i32
    %c0_i32_0 = arith.constant 0 : i32
    %c0_i32_1 = arith.constant 0 : i32
    return %c0_i32, %c0_i32_0 : i32, i32
  }
  func.func @transform_3(%arg0: i32) -> (i32, i32) {
    %c0_i32 = arith.constant 0 : i32
    %c0_i32_0 = arith.constant 0 : i32
    %c0_i32_1 = arith.constant 0 : i32
    return %c0_i32, %c0_i32_0 : i32, i32
  }
  func.func @transform_4(%arg0: i32) -> (i32, i32) {
    %c0_i32 = arith.constant 0 : i32
    %c0_i32_0 = arith.constant 0 : i32
    %c0_i32_1 = arith.constant 0 : i32
    return %c0_i32, %c0_i32_0 : i32, i32
  }
  func.func @transform_5(%arg0: i32) -> (i32, i32) {
    %c0_i32 = arith.constant 0 : i32
    %c0_i32_0 = arith.constant 0 : i32
    %c0_i32_1 = arith.constant 0 : i32
    return %c0_i32, %c0_i32_0 : i32, i32
  }
  func.func @transform_6(%arg0: i32) -> (i32, i32) {
    %c0_i32 = arith.constant 0 : i32
    %c0_i32_0 = arith.constant 0 : i32
    %c0_i32_1 = arith.constant 0 : i32
    return %c0_i32, %c0_i32_0 : i32, i32
  }
  func.func @transform_7(%arg0: i32) -> (i32, i32) {
    %c0_i32 = arith.constant 0 : i32
    %c0_i32_0 = arith.constant 0 : i32
    return %arg0, %c0_i32 : i32, i32
  }
}

</mosaic_0001>

<bundles_post_ra>
// kernel: bert4sc_forward.11
= control target key start
LH: loop header
LB: loop body
LE: loop exit
PB: predicated region body
PF: predicated region fallthrough
CT: control target
= control target key end

     0   :  { %s318_s12 = smov 0   ;;  %s338_s0 = inlined_call_operand.vmem [shape: f32[16,32], index: 0, kind: input, shape index: {}]   ;;  %s339_s1 = inlined_call_operand.vmem [shape: bf16[32,96], index: 1, kind: input, shape index: {}]   ;;  %s340_s2 = inlined_call_operand.vmem [shape: f32[1,96], index: 2, kind: input, shape index: {}]   ;;  %s341_s3 = inlined_call_operand.vmem [shape: f32[16,96], index: 3, kind: output, shape index: {}]  }
   0x1 LB: > { %s261_s13 = sadd.s32 4294967295, %s296_s12   ;;  %p265_p0 = scmp.ge.s32.totalorder %s296_s12, 1  ;;  %s296_s12 = sphi %s318_s12, %s13_s12  }
   0x2   : > { %p136_p1 = scmp.lt.s32.totalorder %s296_s12, 3 }
   0x4   : > { %p137_p2 = pnand %p265_p0, %p136_p1 }
   0x5   : > { %p158_p3 = scmp.lt.s32.totalorder (!%p137_p2), %s261_s13, 1 }
   0x6   : > { %140 = sbr.rel (%p137_p2) target bundleno = 153 (0x99), region = 32 }
   0xb   : > { %v280_v0 = vld [vmem:[%s339_s1 + $0x8] sm:$0xff]  ;;  %v279_v1 = vld [vmem:[%s339_s1] sm:$0xff]  ;;  %s343_s13 = smov (!%p158_p3, %s261_s13), 1  ;;  %vm189_vm0 = vcmask 261120   ;;  %vm206_vm1 = vcmask 785408  }
   0xc   : > { %199 = vmatpush.bf16.msra.mxu0 %v280_v0  ;;  %s266_s18 = sshll.u32 %s343_s13, 3  ;;  %v289_v4 = vld [vmem:[%s340_s2] ss:$0 sm:$0xff] }
   0xd   : > { %s161_s21 = scalar_lea.vmem %s338_s0, %s266_s18  ;;  %s165_s26 = scalar_lea.vmem %s341_s3, %s266_s18 }
   0xe   : > { %v167_v2 = vld [vmem:[%s161_s21] sm:$0xff] }
   0xf   : > { %v168_v3 = vpack.c.bf16 %v167_v2, %v167_v2 }
  0x10   : > { %200 = vmatpush.bf16.msra.mxu0 %v279_v1 }
  0x13   : > { %276 = vmatmul.msk.bf16.vlgmr.msra.gmra.mxu0 %vm189_vm0, %v168_v3 }
  0x90   : > { %v202_v5 = vpop.f32.mrf.mxu0 }
  0x91   : > { %v203_v6 = vadd.f32 %v289_v4, %v202_v5 }
  0x93   : > { %207 = vst.msk [vmem:[%s165_s26] sm:$0xff] %vm206_vm1, %v203_v6 }
  0x98   : > { %v204_v7 = vpop.f32.mrf.mxu0 }
  0x99 PF: > { %s13_s12 = sadd.s32 1, %s296_s12  }
  0x9a   : > { %p10_p4 = scmp.ge.s32.totalorder %s13_s12, 4  }
  0x9c   :  { %12 = sbr.rel (!%p10_p4) target bundleno = 1 (0x1), region = 62 }

// kernel: bert4sc_forward.10
= control target key start
LH: loop header
LB: loop body
LE: loop exit
PB: predicated region body
PF: predicated region fallthrough
CT: control target
= control target key end

     0   :  { %s314_s12 = smov 0   ;;  %s347_s0 = inlined_call_operand.vmem [shape: f32[16,32], index: 0, kind: input, shape index: {}]   ;;  %s348_s1 = inlined_call_operand.vmem [shape: f32[1,32], index: 1, kind: input, shape index: {}]   ;;  %s349_s2 = inlined_call_operand.vmem [shape: f32[1,32], index: 2, kind: input, shape index: {}]   ;;  %s350_s3 = inlined_call_operand.vmem [shape: f32[16,32], index: 3, kind: output, shape index: {}]  }
   0x1 LB: > { %s261_s13 = sadd.s32 4294967295, %s291_s12   ;;  %p265_p0 = scmp.ge.s32.totalorder %s291_s12, 1  ;;  %s291_s12 = sphi %s314_s12, %s13_s12  }
   0x2   : > { %p136_p1 = scmp.lt.s32.totalorder %s291_s12, 3 }
   0x4   : > { %p137_p2 = pnand %p265_p0, %p136_p1 }
   0x5   : > { %p158_p3 = scmp.lt.s32.totalorder (!%p137_p2), %s261_s13, 1 }
   0x6   : > { %140 = sbr.rel (%p137_p2) target bundleno = 284 (0x11c), region = 32 }
   0xb   : > { %s352_s13 = smov (!%p158_p3, %s261_s13), 1  ;;  %vm169_vm0 = vcmask 261120   ;;  %v293_v2 = vmov 32.0   ;;  %v279_v23 = vld [vmem:[%s348_s1] ss:$0 sm:$0xff] }
   0xc   : > { %s266_s14 = sshll.u32 %s352_s13, 3  ;;  %281 = vrcp.f32 %v293_v2  ;;  %v280_v25 = vld [vmem:[%s349_s2] ss:$0 sm:$0xff] }
   0xd   : > { %s161_s17 = scalar_lea.vmem %s347_s0, %s266_s14  ;;  %s165_s24 = scalar_lea.vmem %s350_s3, %s266_s14 }
   0xe   : > { %v166_v0 = vld [vmem:[%s161_s17] sm:$0xff] }
   0xf   : > { %v170_v1 = vsel %vm169_vm0, %v166_v0, 0.0 }
  0x10   : > { %171 = vadd.xlane.f32.xlu0 %v170_v1 }
  0x12   : > { %v282_v3 = vpop.eup %281 }
  0x13   : > { %v174_v4 = vmul.f32 32.0, %v282_v3  ;;  %vm178_vm1 = vweird.f32 %v282_v3 }
  0x15   : > { %v175_v5 = vsub.f32 1.0, %v174_v4 }
  0x17   : > { %v176_v6 = vmul.f32 %v282_v3, %v175_v5 }
  0x19   : > { %v177_v7 = vadd.f32 %v282_v3, %v176_v6 }
  0x1b   : > { %v179_v8 = vsel %vm178_vm1, %v282_v3, %v177_v7 }
  0x83   : > { %v172_v9 = vpop.xlane.xlu0 %171 }
  0x84   : > { %v180_v10 = vmul.f32 %v179_v8, %v172_v9 }
  0x86   : > { %v181_v11 = vsub.f32 %v166_v0, %v180_v10 }
  0x88   : > { %v182_v12 = vmul.f32 %v181_v11, %v181_v11 }
  0x8a   : > { %v183_v13 = vsel %vm169_vm0, %v182_v12, 0.0 }
  0x8b   : > { %184 = vadd.xlane.f32.xlu0 %v183_v13 }
  0xfe   : > { %v185_v14 = vpop.xlane.xlu0 %184 }
  0xff   : > { %v186_v15 = vmul.f32 %v185_v14, %v179_v8 }
 0x101   : > { %v187_v16 = vadd.f32 1e-12, %v186_v15 }
 0x103   : > { %283 = vrsqrt.f32 %v187_v16  ;;  %vm194_vm3 = vweird.f32 %v187_v16 }
 0x109   : > { %v284_v17 = vpop.eup %283 }
 0x10a   : > { %v189_v18 = vmul.f32 %v284_v17, %v187_v16  ;;  %vm195_vm2 = vweird.f32 %v284_v17 }
 0x10b   : > { %vm196_vm4 = vmor %vm194_vm3, %vm195_vm2 }
 0x10c   : > { %v190_v19 = vmul.f32 %v284_v17, %v189_v18 }
 0x10e   : > { %v191_v20 = vmul.f32 0.5, %v190_v19 }
 0x110   : > { %v192_v21 = vsub.f32 1.5, %v191_v20 }
 0x112   : > { %v193_v22 = vmul.f32 %v284_v17, %v192_v21 }
 0x114   : > { %v197_v24 = vsel %vm196_vm4, %v284_v17, %v193_v22 }
 0x115   : > { %v198_v26 = vmul.f32 %v197_v24, %v181_v11 }
 0x117   : > { %v202_v27 = vmul.f32 %v279_v23, %v198_v26 }
 0x119   : > { %v206_v28 = vadd.f32 %v280_v25, %v202_v27 }
 0x11b   : > { %207 = vst.msk [vmem:[%s165_s24] sm:$0xff] %vm169_vm0, %v206_v28 }
 0x11c PF: > { %s13_s12 = sadd.s32 1, %s291_s12  }
 0x11d   : > { %p10_p4 = scmp.ge.s32.totalorder %s13_s12, 4  }
 0x11f   :  { %12 = sbr.rel (!%p10_p4) target bundleno = 1 (0x1), region = 62 }

// kernel: bert4sc_forward.13
= control target key start
LH: loop header
LB: loop body
LE: loop exit
PB: predicated region body
PF: predicated region fallthrough
CT: control target
= control target key end

     0   :  { %s492_s21 = smov 0   ;;  %s536_s0 = inlined_call_operand.vmem [shape: f32[16,32], index: 0, kind: input, shape index: {}]   ;;  %s537_s1 = inlined_call_operand.vmem [shape: bf16[32,32], index: 1, kind: input, shape index: {}]   ;;  %s538_s2 = inlined_call_operand.vmem [shape: f32[1,32], index: 2, kind: input, shape index: {}]   ;;  %s539_s3 = inlined_call_operand.vmem [shape: f32[16,32], index: 3, kind: input, shape index: {}]   ;;  %s540_s4 = inlined_call_operand.vmem [shape: f32[1,32], index: 4, kind: input, shape index: {}]   ;;  %s541_s5 = inlined_call_operand.vmem [shape: f32[1,32], index: 5, kind: input, shape index: {}]   ;;  %s542_s6 = inlined_call_operand.vmem [shape: f32[16,32], index: 6, kind: output, shape index: {}]  }
   0x1 LB: > { %s411_s22 = sadd.s32 4294967295, %s454_s21   ;;  %p415_p0 = scmp.ge.s32.totalorder %s454_s21, 1  ;;  %s454_s21 = sphi %s492_s21, %s16_s21  }
   0x2   : > { %p220_p1 = scmp.lt.s32.totalorder %s454_s21, 3 }
   0x4   : > { %p221_p2 = pnand %p415_p0, %p220_p1 }
   0x5   : > { %p252_p3 = scmp.lt.s32.totalorder (!%p221_p2), %s411_s22, 1 }
   0x6   : > { %224 = sbr.rel (%p221_p2) target bundleno = 418 (0x1a2), region = 44 }
   0xb   : > { %v431_v0 = vld [vmem:[%s537_s1 + $0x8] sm:$0xff]  ;;  %v430_v1 = vld [vmem:[%s537_s1] sm:$0xff]  ;;  %s544_s22 = smov (!%p252_p3, %s411_s22), 1  ;;  %vm287_vm0 = vcmask 261120   ;;  %v456_v11 = vmov 32.0  }
   0xc   : > { %297 = vmatpush.bf16.msra.mxu0 %v431_v0  ;;  %s506_s27 = sshll.u32 %s544_s22, 3  ;;  %v441_v4 = vld [vmem:[%s538_s2] ss:$0 sm:$0xff]  ;;  %444 = vrcp.f32 %v456_v11 }
   0xd   : > { %s255_s30 = scalar_lea.vmem %s536_s0, %s506_s27  ;;  %s259_s11 = scalar_lea.vmem %s539_s3, %s506_s27  ;;  %v442_v32 = vld [vmem:[%s540_s4] ss:$0 sm:$0xff] }
   0xe   : > { %v265_v2 = vld [vmem:[%s255_s30] sm:$0xff]  ;;  %s263_s18 = scalar_lea.vmem %s542_s6, %s506_s27 }
   0xf   : > { %v266_v3 = vpack.c.bf16 %v265_v2, %v265_v2  ;;  %v304_v6 = vld [vmem:[%s259_s11] sm:$0xff] }
  0x10   : > { %298 = vmatpush.bf16.msra.mxu0 %v430_v1  ;;  %v443_v34 = vld [vmem:[%s541_s5] ss:$0 sm:$0xff] }
  0x12   : > { %v445_v12 = vpop.eup %444 }
  0x13   : > { %427 = vmatmul.msk.bf16.vlgmr.msra.gmra.mxu0 %vm287_vm0, %v266_v3  ;;  %v312_v13 = vmul.f32 32.0, %v445_v12  ;;  %vm316_vm1 = vweird.f32 %v445_v12 }
  0x15   : > { %v313_v14 = vsub.f32 1.0, %v312_v13 }
  0x17   : > { %v314_v15 = vmul.f32 %v445_v12, %v313_v14 }
  0x19   : > { %v315_v16 = vadd.f32 %v445_v12, %v314_v15 }
  0x1b   : > { %v317_v17 = vsel %vm316_vm1, %v445_v12, %v315_v16 }
  0x90   : > { %v300_v5 = vpop.f32.mrf.mxu0 }
  0x91   : > { %v301_v7 = vadd.f32 %v441_v4, %v300_v5 }
  0x93   : > { %v305_v8 = vadd.f32 %v304_v6, %v301_v7 }
  0x95   : > { %v308_v9 = vsel %vm287_vm0, %v305_v8, 0.0 }
  0x96   : > { %309 = vadd.xlane.f32.xlu0 %v308_v9 }
  0x98   : > { %v302_v10 = vpop.f32.mrf.mxu0 }
 0x109   : > { %v310_v18 = vpop.xlane.xlu0 %309 }
 0x10a   : > { %v318_v19 = vmul.f32 %v317_v17, %v310_v18 }
 0x10c   : > { %v319_v20 = vsub.f32 %v305_v8, %v318_v19 }
 0x10e   : > { %v320_v21 = vmul.f32 %v319_v20, %v319_v20 }
 0x110   : > { %v321_v22 = vsel %vm287_vm0, %v320_v21, 0.0 }
 0x111   : > { %322 = vadd.xlane.f32.xlu0 %v321_v22 }
 0x184   : > { %v323_v23 = vpop.xlane.xlu0 %322 }
 0x185   : > { %v324_v24 = vmul.f32 %v323_v23, %v317_v17 }
 0x187   : > { %v325_v25 = vadd.f32 1e-12, %v324_v24 }
 0x189   : > { %446 = vrsqrt.f32 %v325_v25  ;;  %vm332_vm3 = vweird.f32 %v325_v25 }
 0x18f   : > { %v447_v26 = vpop.eup %446 }
 0x190   : > { %v327_v27 = vmul.f32 %v447_v26, %v325_v25  ;;  %vm333_vm2 = vweird.f32 %v447_v26 }
 0x191   : > { %vm334_vm4 = vmor %vm332_vm3, %vm333_vm2 }
 0x192   : > { %v328_v28 = vmul.f32 %v447_v26, %v327_v27 }
 0x194   : > { %v329_v29 = vmul.f32 0.5, %v328_v28 }
 0x196   : > { %v330_v30 = vsub.f32 1.5, %v329_v29 }
 0x198   : > { %v331_v31 = vmul.f32 %v447_v26, %v330_v30 }
 0x19a   : > { %v335_v33 = vsel %vm334_vm4, %v447_v26, %v331_v31 }
 0x19b   : > { %v336_v35 = vmul.f32 %v335_v33, %v319_v20 }
 0x19d   : > { %v340_v36 = vmul.f32 %v442_v32, %v336_v35 }
 0x19f   : > { %v344_v37 = vadd.f32 %v443_v34, %v340_v36 }
 0x1a1   : > { %345 = vst.msk [vmem:[%s263_s18] sm:$0xff] %vm287_vm0, %v344_v37 }
 0x1a2 PF: > { %s16_s21 = sadd.s32 1, %s454_s21  }
 0x1a3   : > { %p13_p4 = scmp.ge.s32.totalorder %s16_s21, 4  }
 0x1a5   :  { %15 = sbr.rel (!%p13_p4) target bundleno = 1 (0x1), region = 77 }

// kernel: bert4sc_forward.12
= control target key start
LH: loop header
LB: loop body
LE: loop exit
PB: predicated region body
PF: predicated region fallthrough
CT: control target
= control target key end

     0   :  { %s561_s9 = smov 0   ;;  %s630_s0 = inlined_call_operand.vmem [shape: f32[16,96], index: 0, kind: input, shape index: {}]   ;;  %s631_s1 = inlined_call_operand.vmem [shape: f32[2,1,8], index: 1, kind: input, shape index: {}]   ;;  %s632_s2 = inlined_call_operand.vmem [shape: f32[16,32], index: 2, kind: output, shape index: {}]  }
   0x1 LB: > { %s468_s10 = sadd.s32 4294967295, %s530_s9   ;;  %p472_p0 = scmp.ge.s32.totalorder %s530_s9, 1  ;;  %s530_s9 = sphi %s561_s9, %s12_s9  }
   0x2   : > { %p119_p1 = scmp.lt.s32.totalorder %s530_s9, 3 }
   0x4   : > { %p120_p2 = pnand %p472_p0, %p119_p1 }
   0x5   : > { %p142_p3 = scmp.lt.s32.totalorder (!%p120_p2), %s468_s10, 1  ;;  %s532_s18 = smov (!%p120_p2), 96  }
   0x6   : > { %123 = sbr.rel (%p120_p2) target bundleno = 1197 (0x4ad), region = 28  ;;  %s533_s19 = smov (!%p120_p2), 88  }
   0x7   : > { %s534_s20 = smov (!%p120_p2), 120   ;;  %s535_s21 = smov (!%p120_p2), 64  }
   0x8   : > { %s536_s22 = smov (!%p120_p2), 80   ;;  %s537_s23 = smov (!%p120_p2), 72  }
   0x9   : > { %s538_s24 = smov (!%p120_p2), 112   ;;  %s539_s25 = smov (!%p120_p2), 104  }
   0xa   : > { %s540_s26 = smov (!%p120_p2), 56   ;;  %s541_s27 = smov (!%p120_p2), 40  }
   0xb   : > { %s634_s10 = smov (!%p142_p3, %s468_s10), 1  ;;  %vm165_vm0 = vcmask 64512   ;;  %vm202_vm1 = vcmask 1043456   ;;  %s542_s28 = smov 48   ;;  %vm400_vm2 = vcmask 130048   ;;  %vm402_vm3 = vcmask 195584  }
   0xc   : > { %s473_s11 = sshll.u32 %s634_s10, 3  ;;  %s148_s17 = scalar_lea.vmem %s631_s1, %s634_s10  ;;  %vm404_vm4 = vcmask 261120  }
   0xd   : > { %s145_s14 = scalar_lea.vmem %s630_s0, %s473_s11  ;;  %v507_v9 = vld [vmem:[%s148_s17] ss:$0 sm:$0xff]  ;;  %s543_s29 = smov 8  }
   0xe   : > { %v154_v0 = vld [vmem:[%s145_s14] sm:$0xff]  ;;  %s544_s30 = smov 16   ;;  %s545_s3 = smov 24  }
   0xf   : > { %v155_v1 = vpack.c.bf16 %v154_v0, %v154_v0  ;;  %s152_s6 = scalar_lea.vmem %s632_s2, %s473_s11 }
  0x11   : > { %v161_v2 = vunpack.c.l.b16 %v155_v1 }
  0x13   : > { %v581_v3 = vpack.c.b16 %v161_v2, %v161_v2 }
  0x15   : > { %163 = vrot.lane.b32.xlu0 %v581_v3, %s532_s18  ;;  %221 = vrot.lane.b32.xlu1 %v581_v3, %s533_s19 }
  0x16   : > { %219 = vrot.lane.b32.xlu2 %v581_v3, %s534_s20 }
  0x1e   : > { %197 = vrot.lane.b32.xlu2 %v581_v3, %s535_s21 }
  0x26   : > { %277 = vrot.lane.b32.xlu2 %v581_v3, %s536_s22 }
  0x2e   : > { %333 = vrot.lane.b32.xlu2 %v581_v3, %s537_s23 }
  0x36   : > { %275 = vrot.lane.b32.xlu2 %v581_v3, %s538_s24 }
  0x3e   : > { %331 = vrot.lane.b32.xlu2 %v581_v3, %s539_s25 }
  0x70   : > { %v220_v8 = vpop.permute.xlu2 %219 }
  0x78   : > { %v198_v14 = vpop.permute.xlu2 %197 }
  0x79   : > { %v204_v19 = vsel %vm202_vm1, %v198_v14, 0 }
  0x7a   : > { %213 = vmatpush.bf16.msra.mxu1 %v204_v19 }
  0x80   : > { %v278_v15 = vpop.permute.xlu2 %277 }
  0x81   : > { %v283_v17 = vsel %vm165_vm0, %v278_v15, 0 }
  0x82   : > { %292 = vmatpush.bf16.xpose.msrb.mxu1 %v283_v17 }
  0x87   : > { %v164_v4 = vpop.permute.xlu0 %163  ;;  %v222_v6 = vpop.permute.xlu1 %221 }
  0x88   : > { %v170_v5 = vsel %vm165_vm0, %v164_v4, 0  ;;  %v227_v7 = vsel %vm165_vm0, %v222_v6, 0  ;;  %v334_v16 = vpop.permute.xlu2 %333 }
  0x89   : > { %179 = vmatpush.bf16.xpose.msra.mxu0 %v170_v5  ;;  %236 = vmatpush.bf16.xpose.msra.mxu2 %v227_v7  ;;  %v339_v18 = vsel %vm165_vm0, %v334_v16, 0 }
  0x90   : > { %475 = vmatmul.msk.bf16.vlgmr.msra.gmra.mxu0 %vm165_vm0, %v155_v1  ;;  %477 = vmatmul.msk.bf16.vlgmr.msra.gmra.mxu2 %vm165_vm0, %v220_v8  ;;  %v276_v20 = vpop.permute.xlu2 %275 }
  0x91   : > { %348 = vmatpush.bf16.xpose.msrb.mxu0 %v339_v18 }
  0x98   : > { %v332_v21 = vpop.permute.xlu2 %331 }
  0xa0   : > { %481 = vmatmul.msk.bf16.vlgmr.msrb.gmra.mxu0 %vm165_vm0, %v332_v21 }
 0x10d   : > { %v181_v10 = vpop.f32.mrf.mxu0 }
 0x10e   : > { %v182_v11 = vadd.f32 %v507_v9, %v181_v10 }
 0x110   : > { %v185_v12 = vsel %vm165_vm0, %v182_v11, -inf }
 0x111   : > { %186 = vmax.xlane.f32.xlu0 %v185_v12 }
 0x113   : > { %v238_v22 = vpop.f32.mrf.mxu2 }
 0x114   : > { %v239_v23 = vadd.f32 %v507_v9, %v238_v22 }
 0x115   : > { %v183_v13 = vpop.f32.mrf.mxu0 }
 0x116   : > { %v242_v25 = vsel %vm165_vm0, %v239_v23, -inf }
 0x117   : > { %243 = vmax.xlane.f32.xlu2 %v242_v25 }
 0x11b   : > { %v240_v28 = vpop.f32.mrf.mxu2 }
 0x11d   : > { %v350_v31 = vpop.f32.mrf.mxu0 }
 0x11e   : > { %v351_v32 = vadd.f32 %v507_v9, %v350_v31 }
 0x120   : > { %v354_v33 = vsel %vm165_vm0, %v351_v32, -inf }
 0x125   : > { %v352_v35 = vpop.f32.mrf.mxu0 }
 0x184   : > { %v187_v24 = vpop.xlane.xlu0 %186 }
 0x185   : > { %v188_v26 = vsub.f32 %v182_v11, %v187_v24 }
 0x187   : > { %v189_v27 = vmul.f32 1.442695, %v188_v26 }
 0x189   : > { %508 = vpow2.f32 %v189_v27 }
 0x18a   : > { %v244_v40 = vpop.xlane.xlu2 %243 }
 0x18b   : > { %v245_v42 = vsub.f32 %v239_v23, %v244_v40 }
 0x18d   : > { %v246_v43 = vmul.f32 1.442695, %v245_v42 }
 0x18f   : > { %v509_v29 = vpop.eup %508 }
 0x190   : > { %v191_v30 = vsel %vm165_vm0, %v509_v29, 0.0 }
 0x191   : > { %192 = vadd.xlane.f32.xlu1 %v191_v30 }
 0x199   : > { %355 = vmax.xlane.f32.xlu1 %v354_v33 }
 0x1b2   : > { %254 = vrot.lane.b32.xlu1 %v581_v3, %s540_s26 }
 0x1ba   : > { %366 = vrot.lane.b32.xlu1 %v581_v3, %s541_s27 }
 0x204   : > { %v193_v34 = vpop.xlane.xlu1 %192 }
 0x205   : > { %510 = vrcp.f32 %v193_v34 }
 0x206   : > { %512 = vpow2.f32 %v246_v43 }
 0x20b   : > { %v511_v36 = vpop.eup %510 }
 0x20c   : > { %v195_v37 = vmul.f32 %v511_v36, %v509_v29  ;;  %v356_v44 = vpop.xlane.xlu1 %355  ;;  %v513_v50 = vpop.eup %512 }
 0x20d   : > { %v357_v47 = vsub.f32 %v351_v32, %v356_v44  ;;  %v248_v52 = vsel %vm165_vm0, %v513_v50, 0.0 }
 0x20e   : > { %v196_v38 = vpack.c.bf16 %v195_v37, %v195_v37 }
 0x20f   : > { %v358_v49 = vmul.f32 1.442695, %v357_v47 }
 0x210   : > { %476 = vmatmul.msk.bf16.vlgmr.msra.gmra.mxu1 %vm165_vm0, %v196_v38 }
 0x211   : > { %514 = vpow2.f32 %v358_v49 }
 0x217   : > { %v515_v53 = vpop.eup %514 }
 0x218   : > { %v360_v54 = vsel %vm165_vm0, %v515_v53, 0.0 }
 0x220   : > { %479 = vmatmul.msk.bf16.vlgmr.msrb.gmra.mxu1 %vm165_vm0, %v276_v20 }
 0x224   : > { %v255_v55 = vpop.permute.xlu1 %254 }
 0x225   : > { %v260_v56 = vsel %vm202_vm1, %v255_v55, 0 }
 0x226   : > { %269 = vmatpush.bf16.msra.mxu3 %v260_v56 }
 0x22c   : > { %v367_v57 = vpop.permute.xlu1 %366 }
 0x22d   : > { %v372_v58 = vsel %vm202_vm1, %v367_v57, 0 }
 0x22e   : > { %381 = vmatpush.bf16.msrb.mxu2 %v372_v58 }
 0x28d   : > { %v607_v39 = vpop.f32.mrf.mxu1 }
 0x295   : > { %v217_v41 = vpop.f32.mrf.mxu1 }
 0x29d   : > { %v294_v45 = vpop.f32.mrf.mxu1 }
 0x29e   : > { %v295_v46 = vadd.f32 %v507_v9, %v294_v45 }
 0x2a0   : > { %v298_v48 = vsel %vm165_vm0, %v295_v46, -inf }
 0x2a1   : > { %299 = vmax.xlane.f32.xlu0 %v298_v48 }
 0x2a5   : > { %v296_v51 = vpop.f32.mrf.mxu1 }
 0x2a9   : > { %249 = vadd.xlane.f32.xlu0 %v248_v52 }
 0x2b1   : > { %361 = vadd.xlane.f32.xlu0 %v360_v54 }
 0x314   : > { %v300_v59 = vpop.xlane.xlu0 %299 }
 0x315   : > { %v301_v60 = vsub.f32 %v295_v46, %v300_v59 }
 0x317   : > { %v302_v61 = vmul.f32 1.442695, %v301_v60 }
 0x319   : > { %516 = vpow2.f32 %v302_v61 }
 0x31c   : > { %v250_v62 = vpop.xlane.xlu0 %249 }
 0x31d   : > { %518 = vrcp.f32 %v250_v62 }
 0x31f   : > { %v517_v63 = vpop.eup %516 }
 0x320   : > { %v304_v0 = vsel %vm165_vm0, %v517_v63, 0.0 }
 0x321   : > { %305 = vadd.xlane.f32.xlu0 %v304_v0 }
 0x323   : > { %v519_v1 = vpop.eup %518 }
 0x324   : > { %v362_v2 = vpop.xlane.xlu0 %361  ;;  %v252_v4 = vmul.f32 %v519_v1, %v513_v50 }
 0x325   : > { %520 = vrcp.f32 %v362_v2 }
 0x326   : > { %v253_v5 = vpack.c.bf16 %v252_v4, %v252_v4 }
 0x328   : > { %478 = vmatmul.msk.bf16.vlgmr.msra.gmra.mxu3 %vm165_vm0, %v253_v5 }
 0x32b   : > { %v521_v6 = vpop.eup %520 }
 0x32c   : > { %v364_v7 = vmul.f32 %v521_v6, %v515_v53 }
 0x32e   : > { %v365_v8 = vpack.c.bf16 %v364_v7, %v364_v7 }
 0x330   : > { %482 = vmatmul.msk.bf16.vlgmr.msrb.gmra.mxu2 %vm165_vm0, %v365_v8 }
 0x335   : > { %310 = vrot.lane.b32.xlu0 %v581_v3, %s542_s28 }
 0x394   : > { %v306_v9 = vpop.xlane.xlu0 %305 }
 0x395   : > { %522 = vrcp.f32 %v306_v9 }
 0x39b   : > { %v523_v10 = vpop.eup %522 }
 0x39c   : > { %v308_v11 = vmul.f32 %v523_v10, %v517_v63 }
 0x39e   : > { %v309_v14 = vpack.c.bf16 %v308_v11, %v308_v11 }
 0x3a7   : > { %v311_v12 = vpop.permute.xlu0 %310 }
 0x3a8   : > { %v316_v13 = vsel %vm202_vm1, %v311_v12, 0 }
 0x3a9   : > { %325 = vmatpush.bf16.msrb.mxu3 %v316_v13 }
 0x3ab   : > { %v271_v15 = vpop.f32.mrf.mxu3 }
 0x3ac   : > { %480 = vmatmul.msk.bf16.vlgmr.msrb.gmra.mxu3 %vm165_vm0, %v309_v14  ;;  %388 = vrot.lane.b32.xlu2 %v271_v15, %s543_s29 }
 0x3b3   : > { %v273_v16 = vpop.f32.mrf.mxu3  ;;  %v383_v17 = vpop.f32.mrf.mxu2 }
 0x3bb   : > { %v385_v18 = vpop.f32.mrf.mxu2 }
 0x406   : > { %v389_v21 = vpop.permute.xlu2 %388 }
 0x407   : > { %v399_v22 = vsel %vm165_vm0, %v607_v39, %v389_v21 }
 0x42f   : > { %v327_v19 = vpop.f32.mrf.mxu3 }
 0x430   : > { %392 = vrot.lane.b32.xlu1 %v327_v19, %s544_s30 }
 0x437   : > { %v329_v3 = vpop.f32.mrf.mxu3 }
 0x438   : > { %396 = vrot.lane.b32.xlu1 %v383_v17, %s545_s3 }
 0x4a2   : > { %v393_v20 = vpop.permute.xlu1 %392 }
 0x4a3   : > { %v401_v23 = vsel %vm400_vm2, %v399_v22, %v393_v20 }
 0x4aa   : > { %v397_v24 = vpop.permute.xlu1 %396 }
 0x4ab   : > { %v403_v25 = vsel %vm402_vm3, %v401_v23, %v397_v24 }
 0x4ac   : > { %405 = vst.msk [vmem:[%s152_s6] sm:$0xff] %vm404_vm4, %v403_v25 }
 0x4ad PF: > { %s12_s9 = sadd.s32 1, %s530_s9  }
 0x4ae   : > { %p9_p4 = scmp.ge.s32.totalorder %s12_s9, 4  }
 0x4b0   :  { %11 = sbr.rel (!%p9_p4) target bundleno = 1 (0x1), region = 61 }

// kernel: bert4sc_forward.19
= control target key start
LH: loop header
LB: loop body
LE: loop exit
PB: predicated region body
PF: predicated region fallthrough
CT: control target
= control target key end

     0   :  { %s225_s0 = inlined_call_operand.vmem [shape: f32[2,32], index: 0, kind: input, shape index: {}]   ;;  %s226_s1 = inlined_call_operand.vmem [shape: bf16[32,32], index: 1, kind: input, shape index: {}]   ;;  %s227_s2 = inlined_call_operand.vmem [shape: f32[1,32], index: 2, kind: input, shape index: {}]   ;;  %s228_s3 = inlined_call_operand.vmem [shape: bf16[32,3], index: 3, kind: input, shape index: {}]   ;;  %s229_s4 = inlined_call_operand.vmem [shape: f32[1,3], index: 4, kind: input, shape index: {}]   ;;  %s230_s5 = inlined_call_operand.hbm [shape: f32[2,3], index: 5, kind: output, shape index: {}]  }
   0x1   :  { %v136_v0 = vld [vmem:[%s226_s1 + $0x8] sm:$0xff]  ;;  %v135_v1 = vld [vmem:[%s226_s1] sm:$0xff] }
   0x2   :  { %54 = vmatpush.bf16.msra.mxu0 %v136_v0  ;;  %v22_v2 = vld [vmem:[%s225_s0] sm:$0x3] }
   0x3   :  { %10 = vsyncpa [#allocation3], 0  ;;  %v23_v3 = vpack.c.bf16 %v22_v2, %v22_v2  ;;  %vm44_vm0 = vcmask 261120   ;;  %v138_v4 = vld [vmem:[%s228_s3 + $0x8] sm:$0xff]  ;;  %v137_v5 = vld [vmem:[%s228_s3] sm:$0xff]  ;;  %s170_s30 = smov [#allocation2]  }
   0x4   :  { %92 = vmatpush.bf16.msra.mxu1 %v138_v4  ;;  %v140_v6 = vld [vmem:[%s227_s2] ss:$0 sm:$0xff]  ;;  %s106_s6 = sshll.u32 %s170_s30, 4  ;;  %s108_s8 = sshll.u32 %s230_s5, 4  ;;  %vm99_vm1 = vcmask 17408   ;;  %s107_s6 = int_to_ptr.vmem [resolvable:$true] %s106_s6  ;;  %s109_s8 = int_to_ptr.hbm [resolvable:$true] %s108_s8 }
   0x5   :  { %v141_v12 = vld [vmem:[%s229_s4] ss:$0 sm:$0xff] }
   0x6   :  { %55 = vmatpush.bf16.msra.mxu0 %v135_v1 }
   0x8   :  { %93 = vmatpush.bf16.msra.mxu1 %v137_v5 }
   0x9   :  { %125 = vmatmul.msk.bf16.vlgmr.msra.gmra.mxu0 %vm44_vm0, %v23_v3 }
  0x86   :  { %v57_v7 = vpop.f32.mrf.mxu0 }
  0x87   :  { %v58_v8 = vadd.f32 %v140_v6, %v57_v7 }
  0x89   :  { %142 = vtanh.f32 %v58_v8 }
  0x8e   :  { %v59_v9 = vpop.f32.mrf.mxu0 }
  0x8f   :  { %v143_v10 = vpop.eup %142 }
  0x90   :  { %v62_v11 = vpack.c.bf16 %v143_v10, %v143_v10 }
  0x92   :  { %134 = vmatmul.msk.bf16.vlgmr.msra.gmra.mxu1 %vm44_vm0, %v62_v11 }
 0x10f   :  { %v95_v13 = vpop.f32.mrf.mxu1 }
 0x110   :  { %v96_v14 = vadd.f32 %v141_v12, %v95_v13 }
 0x112   :  { %100 = vst.msk [vmem:[#allocation2] sm:$0x3] %vm99_vm1, %v96_v14 }
 0x113   :  { %111 = dma.vmem_to_hbm [thread:$0]  %s107_s6, 32, %s109_s8, [#allocation3]  }
 0x117   :  { %v97_v15 = vpop.f32.mrf.mxu1 }
 0x118   :  { %168 = dma.done.wait [#allocation3], 32  }
 0x119   :  { %169 = vsyncadd [#allocation3], 4294967264 }
 0x11a   :  { %116 = vsyncpa [#allocation3], 1 }

// kernel: bert4sc_forward.14
= control target key start
LH: loop header
LB: loop body
LE: loop exit
PB: predicated region body
PF: predicated region fallthrough
CT: control target
= control target key end

     0   :  { %s580_s24 = smov 0   ;;  %s638_s0 = inlined_call_operand.vmem [shape: f32[16,32], index: 0, kind: input, shape index: {}]   ;;  %s639_s1 = inlined_call_operand.vmem [shape: bf16[32,64], index: 1, kind: input, shape index: {}]   ;;  %s640_s2 = inlined_call_operand.vmem [shape: f32[1,64], index: 2, kind: input, shape index: {}]   ;;  %s641_s3 = inlined_call_operand.vmem [shape: bf16[64,32], index: 3, kind: input, shape index: {}]   ;;  %s642_s4 = inlined_call_operand.vmem [shape: f32[1,32], index: 4, kind: input, shape index: {}]   ;;  %s643_s5 = inlined_call_operand.vmem [shape: f32[1,32], index: 5, kind: input, shape index: {}]   ;;  %s644_s6 = inlined_call_operand.vmem [shape: f32[1,32], index: 6, kind: input, shape index: {}]   ;;  %s645_s7 = inlined_call_operand.vmem [shape: f32[16,32], index: 7, kind: output, shape index: {}]  }
   0x1 LB: > { %s471_s25 = sadd.s32 4294967295, %s537_s24   ;;  %p475_p0 = scmp.ge.s32.totalorder %s537_s24, 1  ;;  %s537_s24 = sphi %s580_s24, %s17_s24  }
   0x2   : > { %p236_p1 = scmp.lt.s32.totalorder %s537_s24, 3 }
   0x4   : > { %p237_p2 = pnand %p475_p0, %p236_p1 }
   0x5   : > { %p266_p3 = scmp.lt.s32.totalorder (!%p237_p2), %s471_s25, 1 }
   0x6   : > { %240 = sbr.rel (%p237_p2) target bundleno = 569 (0x239), region = 48 }
   0xb   : > { %v507_v0 = vld [vmem:[%s639_s1 + $0x8] sm:$0xff]  ;;  %v506_v1 = vld [vmem:[%s639_s1] sm:$0xff]  ;;  %s647_s25 = smov (!%p266_p3, %s471_s25), 1  ;;  %vm297_vm0 = vcmask 261120   ;;  %v511_v4 = vld [vmem:[%s641_s3 + $0x18] sm:$0xff]  ;;  %vm360_vm1 = vcmask 523264  }
   0xc   : > { %307 = vmatpush.bf16.msra.mxu0 %v507_v0  ;;  %s476_s30 = sshll.u32 %s647_s25, 3  ;;  %368 = vmatpush.bf16.msra.mxu1 %v511_v4  ;;  %v510_v5 = vld [vmem:[%s641_s3 + $0x10] sm:$0xff]  ;;  %v509_v6 = vld [vmem:[%s641_s3 + $0x8] sm:$0xff]  ;;  %v508_v7 = vld [vmem:[%s641_s3] sm:$0xff]  ;;  %v539_v28 = vmov 32.0  }
   0xd   : > { %s269_s10 = scalar_lea.vmem %s638_s0, %s476_s30  ;;  %v521_v8 = vld [vmem:[%s640_s2] ss:$0 sm:$0xff]  ;;  %s273_s9 = scalar_lea.vmem %s645_s7, %s476_s30 }
   0xe   : > { %v275_v2 = vld [vmem:[%s269_s10] sm:$0xff] }
   0xf   : > { %v276_v3 = vpack.c.bf16 %v275_v2, %v275_v2  ;;  %v522_v22 = vld [vmem:[%s642_s4] ss:$0 sm:$0xff] }
  0x10   : > { %308 = vmatpush.bf16.msra.mxu0 %v506_v1  ;;  %369 = vmatpush.bf16.msra.mxu1 %v510_v5  ;;  %v523_v49 = vld [vmem:[%s643_s5] ss:$0 sm:$0xff] }
  0x11   : > { %v524_v51 = vld [vmem:[%s644_s6] ss:$0 sm:$0xff] }
  0x13   : > { %486 = vmatmul.msk.bf16.vlgmr.msra.gmra.mxu0 %vm297_vm0, %v276_v3 }
  0x14   : > { %370 = vmatpush.bf16.msra.mxu1 %v509_v6 }
  0x18   : > { %371 = vmatpush.bf16.msra.mxu1 %v508_v7 }
  0x90   : > { %v310_v9 = vpop.f32.mrf.mxu0 }
  0x91   : > { %v311_v10 = vadd.f32 %v521_v8, %v310_v9 }
  0x93   : > { %v315_v11 = vmul.f32 0.044715, %v311_v10  ;;  %v314_v18 = vmul.f32 0.5, %v311_v10 }
  0x95   : > { %v316_v12 = vmul.f32 %v315_v11, %v311_v10 }
  0x97   : > { %v317_v13 = vmul.f32 %v316_v12, %v311_v10 }
  0x98   : > { %v312_v14 = vpop.f32.mrf.mxu0 }
  0x99   : > { %v318_v15 = vadd.f32 %v317_v13, %v311_v10 }
  0x9b   : > { %v319_v16 = vmul.f32 0.7978846, %v318_v15 }
  0x9d   : > { %525 = vtanh.f32 %v319_v16 }
  0x9e   : > { %527 = vrcp.f32 %v539_v28 }
  0xa3   : > { %v526_v17 = vpop.eup %525 }
  0xa4   : > { %v321_v19 = vadd.f32 1.0, %v526_v17  ;;  %v528_v29 = vpop.eup %527 }
  0xa5   : > { %v384_v30 = vmul.f32 32.0, %v528_v29  ;;  %vm388_vm2 = vweird.f32 %v528_v29 }
  0xa6   : > { %v322_v20 = vmul.f32 %v321_v19, %v314_v18 }
  0xa7   : > { %v385_v31 = vsub.f32 1.0, %v384_v30 }
  0xa8   : > { %v323_v21 = vpack.c.bf16 %v322_v20, %v322_v20 }
  0xa9   : > { %v386_v32 = vmul.f32 %v528_v29, %v385_v31 }
  0xaa   : > { %503 = vmatmul.msk.bf16.vlgmr.msra.gmra.mxu1 %vm360_vm1, %v323_v21 }
  0xab   : > { %v387_v33 = vadd.f32 %v528_v29, %v386_v32 }
  0xad   : > { %v389_v34 = vsel %vm388_vm2, %v528_v29, %v387_v33 }
 0x127   : > { %v373_v23 = vpop.f32.mrf.mxu1 }
 0x128   : > { %v374_v24 = vadd.f32 %v522_v22, %v373_v23 }
 0x12a   : > { %v377_v25 = vadd.f32 %v374_v24, %v275_v2 }
 0x12c   : > { %v380_v26 = vsel %vm297_vm0, %v377_v25, 0.0 }
 0x12d   : > { %381 = vadd.xlane.f32.xlu0 %v380_v26 }
 0x12f   : > { %v375_v27 = vpop.f32.mrf.mxu1 }
 0x1a0   : > { %v382_v35 = vpop.xlane.xlu0 %381 }
 0x1a1   : > { %v390_v36 = vmul.f32 %v389_v34, %v382_v35 }
 0x1a3   : > { %v391_v37 = vsub.f32 %v377_v25, %v390_v36 }
 0x1a5   : > { %v392_v38 = vmul.f32 %v391_v37, %v391_v37 }
 0x1a7   : > { %v393_v39 = vsel %vm297_vm0, %v392_v38, 0.0 }
 0x1a8   : > { %394 = vadd.xlane.f32.xlu0 %v393_v39 }
 0x21b   : > { %v395_v40 = vpop.xlane.xlu0 %394 }
 0x21c   : > { %v396_v41 = vmul.f32 %v395_v40, %v389_v34 }
 0x21e   : > { %v397_v42 = vadd.f32 1e-12, %v396_v41 }
 0x220   : > { %529 = vrsqrt.f32 %v397_v42  ;;  %vm404_vm4 = vweird.f32 %v397_v42 }
 0x226   : > { %v530_v43 = vpop.eup %529 }
 0x227   : > { %v399_v44 = vmul.f32 %v530_v43, %v397_v42  ;;  %vm405_vm3 = vweird.f32 %v530_v43 }
 0x228   : > { %vm406_vm5 = vmor %vm404_vm4, %vm405_vm3 }
 0x229   : > { %v400_v45 = vmul.f32 %v530_v43, %v399_v44 }
 0x22b   : > { %v401_v46 = vmul.f32 0.5, %v400_v45 }
 0x22d   : > { %v402_v47 = vsub.f32 1.5, %v401_v46 }
 0x22f   : > { %v403_v48 = vmul.f32 %v530_v43, %v402_v47 }
 0x231   : > { %v407_v50 = vsel %vm406_vm5, %v530_v43, %v403_v48 }
 0x232   : > { %v408_v52 = vmul.f32 %v407_v50, %v391_v37 }
 0x234   : > { %v412_v53 = vmul.f32 %v523_v49, %v408_v52 }
 0x236   : > { %v416_v54 = vadd.f32 %v524_v51, %v412_v53 }
 0x238   : > { %417 = vst.msk [vmem:[%s273_s9] sm:$0xff] %vm297_vm0, %v416_v54 }
 0x239 PF: > { %s17_s24 = sadd.s32 1, %s537_s24  }
 0x23a   : > { %p14_p4 = scmp.ge.s32.totalorder %s17_s24, 4  }
 0x23c   :  { %16 = sbr.rel (!%p14_p4) target bundleno = 1 (0x1), region = 78 }

</bundles_post_ra>
